<compile_context>
chip_gen: v7x
topology: tpu7x:2x2x1
jax: 0.10.0
libtpu: 0.0.40
codegen_flags: <defaults>
</compile_context>

<pallas_src>
import functools
from typing import NamedTuple

import numpy as np
import jax
import jax.numpy as jnp
from jax.experimental import pallas as pl
from jax.experimental.pallas import tpu as pltpu


# ----------------------------- data structures ------------------------------

class PntFul(NamedTuple):
    pos_xyz: jnp.ndarray   # (B, N, 3) float32 cartesian positions
    cel_mat: jnp.ndarray   # (B, 3, 3) float32, rows are lattice vectors
    pbc: jnp.ndarray       # (B, 3) bool


class AdjSftSpc(NamedTuple):
    adj: np.ndarray        # (4, P) int32, rows = [n, i, j, s]
    sft: np.ndarray        # (S, 3) float32 lattice shifts (integers stored as float)
    spc: np.ndarray        # (B, N, 3) float32 cell offsets (carried, unused here)


TP = 512  # pairs per kernel tile (lane width). 512 keeps per-step work well above
          # the ~0.35us grid overhead while the (K, TP) one-hot stays ~0.5 MiB.
# TODO(synk): for very large B*N the (BNp+BSp, TP) one-hot should be chunked along
# the contraction axis (second "arbitrary" grid dim) to bound VMEM on v7x (64 MiB).


# ------------------------------- Pallas kernel -------------------------------

def _vec_sod_kernel(idx_ref, cat_ref, out_ref):
    """One tile of TP pairs.

    idx_ref : (3, TP) int32  rows = [n*N+i, n*N+j, BNp + n*S+s]  (flattened gathers)
    cat_ref : (8, K)  f32    rows 0-2 = [pos_t | sft_cart_t], rows 3-7 = 0
                             columns 0..BNp-1 -> pos[b*N+a], BNp.. -> (sft@cel)[b*S+s]
    out_ref : (8, TP) f32    rows 0-2 = vec, row 3 = sod, rows 4-7 = 0
    """
    idx = idx_ref[...]                              # (3, TP)
    cat = cat_ref[...]                              # (8, K)
    k = cat.shape[1]
    tp = idx.shape[1]

    idx_i = idx[0:1, :]
    idx_j = idx[1:2, :]
    idx_s = idx[2:3, :]

    # Single combined one-hot: +1 at j column, -1 at i column, +1 at shift column.
    iota = jax.lax.broadcasted_iota(jnp.int32, (k, tp), 0)
    m = ((iota == idx_j).astype(jnp.float32)
         - (iota == idx_i).astype(jnp.float32)
         + (iota == idx_s).astype(jnp.float32))     # (K, TP)

    # One fused MXU gather: rows 0-2 -> vec = pos_j - pos_i + sft@cel; rows 3-7 -> 0.
    vec8 = jnp.dot(cat, m, preferred_element_type=jnp.float32)   # (8, TP)

    sod = jnp.sum(vec8 * vec8, axis=0, keepdims=True)            # (1, TP) (rows 3-7 are 0)
    row = jax.lax.broadcasted_iota(jnp.int32, (8, tp), 0)
    out_ref[...] = jnp.where(row == 3, sod, vec8)                # single unmasked 8-sublane store


@functools.partial(jax.jit, static_argnames=("bn_pad", "bs_pad"))
def _vec_sod_device(idx_pad, pos_xyz, cel_mat, sft, bn_pad, bs_pad):
    """Device-side prep (transpose, sft@cel) + the Pallas kernel, all under one jit."""
    B, N, _ = pos_xyz.shape
    S = sft.shape[0]
    k_tot = bn_pad + bs_pad

    pos_t = jnp.transpose(pos_xyz.astype(jnp.float32), (2, 0, 1)).reshape(3, B * N)
    sft_cart = jnp.einsum("sd,bdk->bsk", sft.astype(jnp.float32),
                          cel_mat.astype(jnp.float32))           # (B, S, 3)
    sftc_t = jnp.transpose(sft_cart, (2, 0, 1)).reshape(3, B * S)

    cat = jnp.zeros((8, k_tot), jnp.float32)
    cat = cat.at[:3, :B * N].set(pos_t)
    cat = cat.at[:3, bn_pad:bn_pad + B * S].set(sftc_t)

    p_pad = idx_pad.shape[1]
    out = pl.pallas_call(
        _vec_sod_kernel,
        out_shape=jax.ShapeDtypeStruct((8, p_pad), jnp.float32),
        grid_spec=pltpu.PrefetchScalarGridSpec(
            num_scalar_prefetch=0,
            grid=(p_pad // TP,),
            in_specs=[
                pl.BlockSpec((3, TP), lambda p: (0, p)),
                pl.BlockSpec((8, k_tot), lambda p: (0, 0)),
            ],
            out_specs=pl.BlockSpec((8, TP), lambda p: (0, p)),
        ),
        compiler_params=pltpu.CompilerParams(
            dimension_semantics=("parallel",)),
    )(idx_pad, cat)
    return out


# --------------------------- host-side index prep ----------------------------

def _round_up(x, m):
    return ((x + m - 1) // m) * m


def _prepare_idx(adj_np, B, N, S):
    """Flattened gather indices (3, p_pad) int32, plus padded operand widths."""
    P = adj_np.shape[1]
    bn_pad = _round_up(max(B * N, 1), 128)
    bs_pad = _round_up(max(B * S, 1), 128)
    p_pad = _round_up(max(P, 1), TP)
    n, i, j, s = adj_np.astype(np.int64)
    idx = np.zeros((3, p_pad), np.int32)
    idx[0, :P] = n * N + i
    idx[1, :P] = n * N + j
    idx[2, :P] = bn_pad + n * S + s
    return jnp.asarray(idx), bn_pad, bs_pad


def coo2_vec_sod(adj: AdjSftSpc, pos_xyz, cel_mat, prep=None):
    """vec (P,3), sod (P,) as host numpy arrays (single D2H copy)."""
    B, N, _ = pos_xyz.shape
    S = adj.sft.shape[0]
    P = adj.adj.shape[1]
    if prep is None:
        prep = _prepare_idx(np.asarray(adj.adj, np.int32), B, N, S)
    idx_pad, bn_pad, bs_pad = prep
    out = _vec_sod_device(idx_pad, jnp.asarray(pos_xyz), jnp.asarray(cel_mat),
                          jnp.asarray(adj.sft, jnp.float32), bn_pad, bs_pad)
    out_np = np.asarray(jax.block_until_ready(out))
    vec = out_np[:3, :P].T          # host transpose (cutoff is host-side anyway)
    sod = out_np[3, :P]
    return vec, sod


def cutoff_coo2(adj: AdjSftSpc, vec, sod, rc):
    # TODO(synk): dynamic-shape boolean compaction has no static-shape Pallas
    # equivalent; performed host-side (matches torch adj[:, val]).
    val = sod <= rc * rc
    new_adj = np.asarray(adj.adj)[:, val]
    return AdjSftSpc(adj=new_adj, sft=adj.sft, spc=adj.spc), (vec[val], sod[val])


# -------------------- full-index neighbor enumeration (host) -----------------

def _make_shifts(shift_range=1):
    r = shift_range
    rng = np.arange(-r, r + 1)
    shifts = np.stack(np.meshgrid(rng, rng, rng, indexing="ij"),
                      axis=-1).reshape(-1, 3).astype(np.float32)
    zero = int(np.where((shifts == 0).all(axis=1))[0][0])
    order = np.concatenate([[zero], np.delete(np.arange(len(shifts)), zero)])
    return shifts[order]                            # zero shift is index 0


def _full_index_adj(B, N, S):
    n = np.repeat(np.arange(B, dtype=np.int32), S * N * N)
    s = np.tile(np.repeat(np.arange(S, dtype=np.int32), N * N), B)
    i = np.tile(np.repeat(np.arange(N, dtype=np.int32), N), B * S)
    j = np.tile(np.arange(N, dtype=np.int32), B * S * N)
    keep = ~((s == 0) & (i == j))
    return np.stack([n, i, j, s])[:, keep]


# ------------------------------ the module -----------------------------------

class Coo2FulPntSft:
    """Pallas/JAX port of pointneighbor's Coo2FulPntSft(rc) forward."""

    def __init__(self, rc: float, shift_range: int = 1):
        self.rc = rc
        # TODO(synk): real coo2_ful_pntsft derives the shift range per axis from rc,
        # the cell widths and pbc; fixed shift_range=1 here (covers rc < cell width).
        self.shift_range = shift_range
        self._cache = {}           # (B, N) -> (adj, sft, spc, idx_pad, bn_pad, bs_pad)
        self.adj_full = None       # last full (pre-cutoff) adjacency, for inspection
        self.sft_full = None
        self.spc_full = None

    def __call__(self, pe: PntFul) -> AdjSftSpc:
        B, N, _ = pe.pos_xyz.shape
        key = (B, N, self.shift_range)
        if key not in self._cache:
            sft = _make_shifts(self.shift_range)
            adj_np = _full_index_adj(B, N, sft.shape[0])
            spc = np.zeros((B, N, 3), np.float32)   # TODO(synk): carried, unused here
            prep = _prepare_idx(adj_np, B, N, sft.shape[0])
            self._cache[key] = (adj_np, sft, spc, prep)
        adj_np, sft, spc, prep = self._cache[key]
        self.adj_full, self.sft_full, self.spc_full = adj_np, sft, spc

        adj_full = AdjSftSpc(adj=adj_np, sft=sft, spc=spc)
        vec, sod = coo2_vec_sod(adj_full, pe.pos_xyz, pe.cel_mat, prep=prep)
        adj_out, _ = cutoff_coo2(adj_full, vec, sod, self.rc)
        return adj_out


# --------------------------------- main ---------------------------------------

if __name__ == "__main__":
    key = jax.random.PRNGKey(0)
    B, N = 2, 16
    box = 6.0
    pos = jax.random.uniform(key, (B, N, 3), jnp.float32) * box
    cel = jnp.tile(jnp.eye(3, dtype=jnp.float32) * box, (B, 1, 1))
    pbc = jnp.ones((B, 3), dtype=bool)
    pe = PntFul(pos_xyz=pos, cel_mat=cel, pbc=pbc)

    rc = 3.0
    module = Coo2FulPntSft(rc)
    adj_out = module(pe)

    # ---- correctness check against a plain numpy reference of the hot path ----
    adj_full = AdjSftSpc(module.adj_full, module.sft_full, module.spc_full)
    vec_k, sod_k = coo2_vec_sod(adj_full, pe.pos_xyz, pe.cel_mat)

    n_, i_, j_, s_ = np.asarray(module.adj_full)
    posn = np.asarray(pe.pos_xyz)
    celn = np.asarray(pe.cel_mat)
    sftn = np.asarray(module.sft_full)
    vec_ref = posn[n_, j_] + np.einsum("pd,pdk->pk", sftn[s_], celn[n_]) - posn[n_, i_]
    sod_ref = (vec_ref ** 2).sum(-1)

    assert np.allclose(vec_k, vec_ref, atol=1e-5), "vec mismatch"
    assert np.allclose(sod_k, sod_ref, atol=1e-4), "sod mismatch"
    assert adj_out.adj.shape[1] == int((sod_k <= rc * rc).sum()), "cutoff mismatch"

    print("KERNEL_OK")
</pallas_src>

<mosaic_0001>
module attributes {stable_mosaic.version = 11 : i64} {
  func.func @_vec_sod_kernel(%arg0: i32, %arg1: memref<3x512xi32, #tpu.memory_space<vmem>>, %arg2: memref<8x256xf32, #tpu.memory_space<vmem>>, %arg3: memref<8x512xf32, #tpu.memory_space<vmem>>) attributes {dimension_semantics = [#tpu.dimension_semantics<parallel>], iteration_bounds = array<i64: 27>, scalar_prefetch = 0 : i64, scratch_operands = 0 : i64, tpu.core_type = #tpu.core_type<tc>, window_params = [{transform_indices = @transform_0, window_bounds = array<i64: 3, 512>}, {pipeline_mode = #tpu.pipeline_mode<synchronous>, transform_indices = @transform_1, window_bounds = array<i64: 8, 256>}, {transform_indices = @transform_2, window_bounds = array<i64: 8, 512>}]} {
    %c0 = arith.constant 0 : index
    %c0_0 = arith.constant 0 : index
    %0 = vector.load %arg1[%c0, %c0_0] : memref<3x512xi32, #tpu.memory_space<vmem>>, vector<3x512xi32>
    %c0_1 = arith.constant 0 : index
    %c0_2 = arith.constant 0 : index
    %1 = vector.load %arg2[%c0_1, %c0_2] : memref<8x256xf32, #tpu.memory_space<vmem>>, vector<8x256xf32>
    %2 = vector.extract_strided_slice %0 {offsets = [0, 0], sizes = [1, 512], strides = [1, 1]} : vector<3x512xi32> to vector<1x512xi32>
    %3 = vector.extract_strided_slice %0 {offsets = [1, 0], sizes = [1, 512], strides = [1, 1]} : vector<3x512xi32> to vector<1x512xi32>
    %4 = vector.extract_strided_slice %0 {offsets = [2, 0], sizes = [1, 512], strides = [1, 1]} : vector<3x512xi32> to vector<1x512xi32>
    %5 = tpu.iota {dimensions = array<i32: 0>} : vector<256x512xi32>
    %6 = vector.broadcast %3 : vector<1x512xi32> to vector<256x512xi32>
    %7 = arith.cmpi eq, %5, %6 : vector<256x512xi32>
    %8 = arith.extui %7 : vector<256x512xi1> to vector<256x512xi32>
    %9 = arith.sitofp %8 : vector<256x512xi32> to vector<256x512xf32>
    %10 = vector.broadcast %2 : vector<1x512xi32> to vector<256x512xi32>
    %11 = arith.cmpi eq, %5, %10 : vector<256x512xi32>
    %12 = arith.extui %11 : vector<256x512xi1> to vector<256x512xi32>
    %13 = arith.sitofp %12 : vector<256x512xi32> to vector<256x512xf32>
    %14 = arith.subf %9, %13 : vector<256x512xf32>
    %15 = vector.broadcast %4 : vector<1x512xi32> to vector<256x512xi32>
    %16 = arith.cmpi eq, %5, %15 : vector<256x512xi32>
    %17 = arith.extui %16 : vector<256x512xi1> to vector<256x512xi32>
    %18 = arith.sitofp %17 : vector<256x512xi32> to vector<256x512xf32>
    %19 = arith.addf %14, %18 : vector<256x512xf32>
    %cst = arith.constant dense<0.000000e+00> : vector<8x512xf32>
    %20 = tpu.matmul %1, %19, %cst {dimension_numbers = #tpu.dot_dimension_numbers<[1], [0], [0], [1], [0, 0, 1, 1], [], []>} : vector<8x256xf32>, vector<256x512xf32>, vector<8x512xf32> -> vector<8x512xf32>
    %21 = arith.mulf %20, %20 : vector<8x512xf32>
    %cst_3 = arith.constant dense<0.000000e+00> : vector<512xf32>
    %22 = vector.multi_reduction <add>, %21, %cst_3 [0] : vector<8x512xf32> to vector<512xf32>
    %23 = vector.shape_cast %22 : vector<512xf32> to vector<1x512xf32>
    %24 = tpu.iota {dimensions = array<i32: 0>} : vector<8x512xi32>
    %c3_i32 = arith.constant 3 : i32
    %25 = vector.broadcast %c3_i32 : i32 to vector<8x512xi32>
    %26 = arith.cmpi eq, %24, %25 : vector<8x512xi32>
    %27 = vector.shape_cast %23 : vector<1x512xf32> to vector<1x512xf32>
    %28 = vector.broadcast %27 : vector<1x512xf32> to vector<8x512xf32>
    %29 = arith.select %26, %28, %20 : vector<8x512xi1>, vector<8x512xf32>
    %c0_4 = arith.constant 0 : index
    %c0_5 = arith.constant 0 : index
    %30 = vector.load %arg3[%c0_4, %c0_5] : memref<8x512xf32, #tpu.memory_space<vmem>>, vector<8x512xf32>
    tpu.vector_store %arg3[%c0_4, %c0_5], %29 {strides = array<i32>} : memref<8x512xf32, #tpu.memory_space<vmem>>, vector<8x512xf32>,
    return
  }
  func.func @transform_0(%arg0: i32) -> (i32, i32) {
    %c0_i32 = arith.constant 0 : i32
    %c0_i32_0 = arith.constant 0 : i32
    return %c0_i32, %arg0 : i32, i32
  }
  func.func @transform_1(%arg0: i32) -> (i32, i32) {
    %c0_i32 = arith.constant 0 : i32
    %c0_i32_0 = arith.constant 0 : i32
    %c0_i32_1 = arith.constant 0 : i32
    return %c0_i32, %c0_i32_0 : i32, i32
  }
  func.func @transform_2(%arg0: i32) -> (i32, i32) {
    %c0_i32 = arith.constant 0 : i32
    %c0_i32_0 = arith.constant 0 : i32
    return %c0_i32, %arg0 : i32, i32
  }
}

</mosaic_0001>

<bundles_post_ra>
// kernel: _vec_sod_device.1
= control target key start
LH: loop header
LB: loop body
LE: loop exit
PB: predicated region body
PF: predicated region fallthrough
CT: control target
= control target key end

     0   :  { %7 = vsyncpa [#allocation3], 0  ;;  %s4110_s0 = inlined_call_operand.hbm [shape: s32[3,13824], index: 0, kind: input, shape index: {}]   ;;  %s4111_s1 = inlined_call_operand.vmem [shape: f32[8,256], index: 1, kind: input, shape index: {}]   ;;  %s4112_s2 = inlined_call_operand.hbm [shape: f32[8,13824], index: 2, kind: output, shape index: {}]  }
   0x1   :  { %9 = vsyncpa [#allocation3 + $0x1], 0 }
   0x2   :  { %10 = vsyncpa [#allocation4], 0 }
   0x3   :  { %12 = vsyncpa [#allocation4 + $0x1], 0  ;;  %s2658_s9 = smov 0   ;;  %s2660_s10 = smov 0  }
   0x4   :  { %s2662_s11 = smov 0   ;;  %s2664_s12 = smov 0  }
   0x5 LB: > { %s2679_s13 = sadd.s32 4294967295, %s2638_s12   ;;  %s1967_s14 = sadd.s32 4294967294, %s2638_s12   ;;  %s2638_s12 = sphi %s2664_s12, %s4126_s12   ;;  %s2634_s11 = sphi %s2662_s11, %s4125_s11   ;;  %s2630_s10 = sphi %s2660_s10, %s4124_s10   ;;  %s2626_s9 = sphi %s2658_s9, %s4123_s9  }
   0x6   : > { %s2683_s15 = sadd.s32 1, %s2638_s12   ;;  %s25_s16 = sadd.s32 1, %s2634_s11 }
   0x7   : > { %s22_s17 = ssub.s32 %s2638_s12, %s2683_s15  ;;  %p32_p0 = scmp.ne.s32.totalorder %s2634_s11, %s2630_s10 }
   0x8   : > { %p23_p1 = scmp.eq.s32.totalorder %s22_s17, 0  ;;  %p33_p2 = scmp.eq.s32.totalorder %s2638_s12, 0 }
   0x9   : > { %p38_p3 = scmp.ne.s32.totalorder %s2630_s10, %s2626_s9  ;;  %p39_p4 = scmp.eq.s32.totalorder %s2679_s13, 0 }
   0xa   : > { %s2695_s18 = scalar_select %p23_p1, %s2634_s11, %s25_s16  }
   0xb   : > { %p2697_p5 = por %p33_p2, %p32_p0  ;;  %p2701_p6 = por %p39_p4, %p38_p3 }
   0xc   : > { %p83_p7 = scmp.eq.s32.totalorder %s2679_s13, 26  ;;  %p89_p8 = scmp.eq.s32.totalorder %s1967_s14, 26 }
   0xd   : > { %p2507_p9 = scmp.lt.s32.totalorder %s2638_s12, 27  ;;  %s112_s23 = sand.u32 1, %s2634_s11  }
   0xe   : > { %p2707_p10 = por %p83_p7, %p32_p0  ;;  %p2711_p11 = por %p89_p8, %p38_p3 }
   0xf   : > { %s2365_s24 = sshll.u32 %s2638_s12, 8  ;;  %s1970_s25 = sshll.u32 %s112_s23, 4 }
  0x10   : > { %s4116_s21 = scalar_select %p2707_p10, 1, 0 }
  0x11   : > { %s4117_s22 = scalar_select %p2711_p11, 1, 0 }
  0x12   : > { %s2720_s28 = scalar_lea.hbm %s4110_s0, %s2365_s24  ;;  %s116_s29 = scalar_lea.vmem [#allocation2], %s1970_s25 }
  0x13   : > { %s124_s30 = sshll.u32 %s116_s29, 4  ;;  %p2724_p12 = pnand %p2507_p9, %p2697_p5  ;;  %s2728_s30 = int_to_ptr.vmem [resolvable:$true] %s124_s30 }
  0x14   : > { %s113_s4 = scalar_lea.sflag [#allocation3], %s112_s23  ;;  %s2542_s5 = scalar_lea.hbm %s2720_s28, 256 }
  0x15   : > { %p2543_p1 = scmp.ne.s32.totalorder %s2720_s28, %s2542_s5  ;;  %p2544_p2 = pneg %p2724_p12 }
  0x16   : > { %s2547_s8 = scalar_lea.hbm %s4110_s0, 6912  ;;  %p2548_p5 = scmp.lt.u32.totalorder %s2720_s28, %s4110_s0 }
  0x17   : > { %p2545_p3 = pnand %p2544_p2, %p2543_p1  ;;  %p2549_p7 = scmp.lt.u32.totalorder %s2547_s8, %s2542_s5 }
  0x18   : > { %p2551_p9 = scmp.lt.u32.totalorder %s2542_s5, %s2720_s28 }
  0x19   : > { %p2546_p4 = pneg %p2545_p3  ;;  %p2550_p8 = por %p2549_p7, %p2548_p5 }
  0x1b   : > { %p2552_p13 = por %p2551_p9, %p2550_p8 }
  0x1d   : > { %p2553_p0 = pnand %p2552_p13, %p2546_p4 }
  0x1f   : > { %2556 = shalt.err (!%p2553_p0)
}
  0x20   : > { %s2557_s17 = scalar_lea.vmem %s2728_s30, 256  ;;  %s2640_s19 = smov [#allocation2]  }
  0x21   : > { %p2558_p1 = scmp.ne.s32.totalorder %s2728_s30, %s2557_s17  ;;  %s2562_s23 = sshll.u32 %s2640_s19, 4  ;;  %s2563_s23 = int_to_ptr.vmem [resolvable:$false] %s2562_s23 }
  0x22   : > { %s2564_s24 = scalar_lea.vmem %s2563_s23, 512  ;;  %p2565_p10 = scmp.lt.s32.totalorder %s2728_s30, %s2563_s23 }
  0x23   : > { %p2560_p3 = pnand %p2558_p1, %p2544_p2  ;;  %p2566_p5 = scmp.lt.s32.totalorder %s2564_s24, %s2557_s17 }
  0x25   : > { %p2561_p11 = pneg %p2560_p3  ;;  %p2567_p7 = por %p2566_p5, %p2565_p10 }
  0x27   : > { %p2568_p8 = pnand %p2567_p7, %p2561_p11 }
  0x29   : > { %2571 = shalt.err (!%p2568_p8)
}
  0x2a   : > { %2502 = dma.hbm_to_vmem [thread:$0]  (!%p2724_p12), %s2720_s28, 256, %s2728_s30, %s113_s4  }
  0x2b   : > { %p4119_p13 = scmp.lt.s32.totalorder %s2638_s12, 28  ;;  %p4120_p0 = scmp.ge.s32.totalorder %s2638_s12, 1 }
  0x2d   : > { %p130_p2 = pnand %p4120_p0, %p4119_p13 }
  0x2e   : > { %s2762_s25 = sand.u32 (!%p130_p2), 1, %s2630_s10  }
  0x2f   : > { %133 = sbr.rel (%p130_p2) target bundleno = 596 (0x254), region = 28  ;;  %s1974_s26 = sshll.u32 (!%p130_p2), %s2762_s25, 4 }
  0x30   : > { %s136_s27 = scalar_lea.sflag (!%p130_p2), [#allocation3], %s2762_s25  ;;  %s139_s29 = scalar_lea.vmem (!%p130_p2), [#allocation2], %s1974_s26 }
  0x36   : > { %2617 = dma.done.wait (%p2701_p6), %s136_s27, 256  }
  0x37   : > { %2619 = vsyncadd (%p2701_p6), %s136_s27, 4294967040  ;;  %v166_v0 = vlaneseq  ;;  %v162_v14 = vld [vmem:[%s139_s29] sm:$0x77]  ;;  %v163_v15 = vld [vmem:[%s139_s29 + $0x8] sm:$0x77]  ;;  %v2641_v42 = vmov 0.0  }
  0x38   : > { %s1975_s4 = sshll.u32 %s2762_s25, 5  ;;  %s2366_s6 = sshll.u32 %s2679_s13, 9 }
  0x39   : > { %v2770_v1 = vshrl.u32 %v166_v0, 7  ;;  %s159_s5 = scalar_lea.vmem [#allocation5], %s1975_s4  ;;  %s4065_s16 = scalar_lea.hbm %s4112_s2, %s2366_s6 }
  0x3a   : > { %s1897_s7 = sshll.u32 %s159_s5, 4  ;;  %s1883_s13 = scalar_lea.sflag [#allocation4], %s2762_s25  ;;  %s4067_s7 = int_to_ptr.vmem [resolvable:$true] %s1897_s7 }
  0x3b   : > { %v201_v2 = vsub.s32 1, %v2770_v1  ;;  %v205_v3 = vsub.s32 5, %v2770_v1  ;;  %v617_v4 = vsub.s32 0, %v2770_v1  ;;  %v621_v5 = vsub.s32 4, %v2770_v1  ;;  %s2572_s17 = scalar_lea.vmem %s4067_s7, 512  ;;  %p4121_p10 = scmp.ne.s32.totalorder %s4116_s21, 0 }
  0x3c   : > { %v1161_v6 = vsub.s32 2, %v2770_v1  ;;  %v1165_v7 = vsub.s32 6, %v2770_v1  ;;  %v2779_v8 = vadd.s32 8, %v2770_v1  ;;  %v2782_v9 = vadd.s32 16, %v2770_v1  ;;  %p2573_p6 = scmp.ne.s32.totalorder %s4067_s7, %s2572_s17  ;;  %s2642_s19 = smov [#allocation5]  }
  0x3d   : > { %v2785_v10 = vadd.s32 24, %v2770_v1  ;;  %v2788_v11 = vadd.s32 32, %v2770_v1  ;;  %v2791_v12 = vadd.s32 40, %v2770_v1  ;;  %v2794_v13 = vadd.s32 48, %v2770_v1  ;;  %s2576_s23 = sshll.u32 %s2642_s19, 4  ;;  %s2577_s23 = int_to_ptr.vmem [resolvable:$false] %s2576_s23 }
  0x3e   : > { %v2797_v16 = vadd.s32 56, %v2770_v1  ;;  %v2800_v17 = vadd.s32 64, %v2770_v1  ;;  %v202_v18 = vrot.slane %v162_v14, %v201_v2  ;;  %v206_v19 = vrot.slane %v162_v14, %v205_v3  ;;  %p2574_p11 = pnand %p2573_p6, %p4121_p10  ;;  %s2578_s24 = scalar_lea.vmem %s2577_s23, 1024 }
  0x3f   : > { %v210_v20 = vrot.slane %v163_v15, %v201_v2  ;;  %v214_v21 = vrot.slane %v163_v15, %v205_v3  ;;  %v618_v22 = vrot.slane %v162_v14, %v617_v4  ;;  %v622_v23 = vrot.slane %v162_v14, %v621_v5  ;;  %p2579_p4 = scmp.lt.s32.totalorder %s4067_s7, %s2577_s23  ;;  %p2580_p9 = scmp.lt.s32.totalorder %s2578_s24, %s2572_s17 }
  0x40   : > { %v626_v24 = vrot.slane %v163_v15, %v617_v4  ;;  %v630_v25 = vrot.slane %v163_v15, %v621_v5  ;;  %v2802_v26 = vrot.slane %v202_v18, %v201_v2  ;;  %v2804_v27 = vrot.slane %v206_v19, %v201_v2  ;;  %p2575_p12 = pneg %p2574_p11 }
  0x41   : > { %v2806_v28 = vrot.slane %v210_v20, %v201_v2  ;;  %v2808_v29 = vrot.slane %v214_v21, %v201_v2  ;;  %v2810_v30 = vrot.slane %v618_v22, %v617_v4  ;;  %v2812_v31 = vrot.slane %v622_v23, %v617_v4  ;;  %p2581_p1 = por %p2580_p9, %p2579_p4 }
  0x42   : > { %v2814_v32 = vrot.slane %v626_v24, %v617_v4  ;;  %v2816_v33 = vrot.slane %v630_v25, %v617_v4  ;;  %v1162_v34 = vrot.slane %v162_v14, %v1161_v6  ;;  %v1166_v35 = vrot.slane %v162_v14, %v1165_v7 }
  0x43   : > { %v1170_v36 = vrot.slane %v163_v15, %v1161_v6  ;;  %v1174_v37 = vrot.slane %v163_v15, %v1165_v7  ;;  %vm232_vm0 = vcmp.eq.s32.totalorder %v2770_v1, %v2804_v27  ;;  %vm236_vm1 = vcmp.eq.s32.totalorder %v2779_v8, %v2804_v27  ;;  %p2582_p3 = pnand %p2581_p1, %p2575_p12 }
  0x44   : > { %vm648_vm2 = vcmp.eq.s32.totalorder %v2770_v1, %v2812_v31  ;;  %vm652_vm3 = vcmp.eq.s32.totalorder %v2779_v8, %v2812_v31  ;;  %v2826_v38 = vrot.slane %v1162_v34, %v1161_v6  ;;  %v2828_v39 = vrot.slane %v1166_v35, %v1161_v6 }
  0x45   : > { %v2830_v40 = vrot.slane %v1170_v36, %v1161_v6  ;;  %v2832_v41 = vrot.slane %v1174_v37, %v1161_v6  ;;  %v1977_v43 = vsel %vm232_vm0, 1.0, %v2641_v42  ;;  %v1981_v44 = vsel %vm236_vm1, 1.0, %v2641_v42 }
  0x46   : > { %v2105_v45 = vsel %vm648_vm2, 1.0, %v2641_v42  ;;  %v2109_v46 = vsel %vm652_vm3, 1.0, %v2641_v42  ;;  %vm1192_vm4 = vcmp.eq.s32.totalorder %v2770_v1, %v2828_v39  ;;  %vm1196_vm5 = vcmp.eq.s32.totalorder %v2779_v8, %v2828_v39 }
  0x47   : > { %v1032_v47 = vsub.f32 %v1977_v43, %v2105_v45  ;;  %v1036_v48 = vsub.f32 %v1981_v44, %v2109_v46  ;;  %v2233_v49 = vsel %vm1192_vm4, 1.0, %v2641_v42  ;;  %v2237_v50 = vsel %vm1196_vm5, 1.0, %v2641_v42 }
  0x48   : > { %vm234_vm6 = vcmp.eq.s32.totalorder %v2770_v1, %v2808_v29  ;;  %vm238_vm7 = vcmp.eq.s32.totalorder %v2779_v8, %v2808_v29  ;;  %vm650_vm8 = vcmp.eq.s32.totalorder %v2770_v1, %v2816_v33  ;;  %vm654_vm9 = vcmp.eq.s32.totalorder %v2779_v8, %v2816_v33 }
  0x49   : > { %v1576_v51 = vadd.f32 %v2233_v49, %v1032_v47  ;;  %v1580_v52 = vadd.f32 %v2237_v50, %v1036_v48  ;;  %v1979_v53 = vsel %vm234_vm6, 1.0, %v2641_v42  ;;  %v1983_v54 = vsel %vm238_vm7, 1.0, %v2641_v42 }
  0x4a   : > { %vm1194_vm10 = vcmp.eq.s32.totalorder %v2770_v1, %v2832_v41  ;;  %vm1198_vm11 = vcmp.eq.s32.totalorder %v2779_v8, %v2832_v41  ;;  %v2107_v56 = vsel %vm650_vm8, 1.0, %v2641_v42  ;;  %v2111_v57 = vsel %vm654_vm9, 1.0, %v2641_v42 }
  0x4b   : > { %v2367_v55 = vpack.c.bf16 %v1580_v52, %v1576_v51  ;;  %v2235_v58 = vsel %vm1194_vm10, 1.0, %v2641_v42  ;;  %v1034_v59 = vsub.f32 %v1979_v53, %v2107_v56  ;;  %v1038_v60 = vsub.f32 %v1983_v54, %v2111_v57 }
  0x4c   : > { %v2239_v61 = vsel %vm1198_vm11, 1.0, %v2641_v42  ;;  %vm231_vm12 = vcmp.eq.s32.totalorder %v2770_v1, %v2802_v26  ;;  %vm235_vm13 = vcmp.eq.s32.totalorder %v2779_v8, %v2802_v26  ;;  %vm647_vm14 = vcmp.eq.s32.totalorder %v2770_v1, %v2810_v30 }
  0x4d   : > { %2368 = vmatprep.subr.bf16.mxu0 %v2367_v55  ;;  %v1976_v62 = vsel %vm231_vm12, 1.0, %v2641_v42  ;;  %vm651_vm15 = vcmp.eq.s32.totalorder %v2779_v8, %v2810_v30  ;;  %v1578_v63 = vadd.f32 %v2235_v58, %v1034_v59  ;;  %v1582_v0 = vadd.f32 %v2239_v61, %v1038_v60 }
  0x4e   : > { %v1980_v2 = vsel %vm235_vm13, 1.0, %v2641_v42  ;;  %v2104_v3 = vsel %vm647_vm14, 1.0, %v2641_v42  ;;  %v2108_v4 = vsel %vm651_vm15, 1.0, %v2641_v42  ;;  %vm1191_vm0 = vcmp.eq.s32.totalorder %v2770_v1, %v2826_v38 }
  0x4f   : > { %v1031_v5 = vsub.f32 %v1976_v62, %v2104_v3  ;;  %vm1195_vm1 = vcmp.eq.s32.totalorder %v2779_v8, %v2826_v38  ;;  %v2431_v6 = vpack.c.bf16 %v1582_v0, %v1578_v63  ;;  %v1035_v7 = vsub.f32 %v1980_v2, %v2108_v4 }
  0x50   : > { %v2232_v14 = vsel %vm1191_vm0, 1.0, %v2641_v42  ;;  %v2236_v15 = vsel %vm1195_vm1, 1.0, %v2641_v42  ;;  %vm233_vm2 = vcmp.eq.s32.totalorder %v2770_v1, %v2806_v28  ;;  %vm237_vm3 = vcmp.eq.s32.totalorder %v2779_v8, %v2806_v28 }
  0x51   : > { %v1575_v18 = vadd.f32 %v2232_v14, %v1031_v5  ;;  %vm649_vm4 = vcmp.eq.s32.totalorder %v2770_v1, %v2814_v32  ;;  %2432 = vmatprep.subr.bf16.mxu1 %v2431_v6  ;;  %v1579_v19 = vadd.f32 %v2236_v15, %v1035_v7  ;;  %v1978_v20 = vsel %vm233_vm2, 1.0, %v2641_v42 }
  0x52   : > { %v1982_v21 = vsel %vm237_vm3, 1.0, %v2641_v42  ;;  %vm653_vm5 = vcmp.eq.s32.totalorder %v2779_v8, %v2814_v32  ;;  %v2106_v22 = vsel %vm649_vm4, 1.0, %v2641_v42  ;;  %vm1193_vm6 = vcmp.eq.s32.totalorder %v2770_v1, %v2830_v40 }
  0x53   : > { %v2110_v23 = vsel %vm653_vm5, 1.0, %v2641_v42  ;;  %vm1197_vm7 = vcmp.eq.s32.totalorder %v2779_v8, %v2830_v40  ;;  %v2369_v24 = vpack.c.bf16 %v1579_v19, %v1575_v18  ;;  %v1033_v25 = vsub.f32 %v1978_v20, %v2106_v22 }
  0x54   : > { %v1037_v34 = vsub.f32 %v1982_v21, %v2110_v23  ;;  %v2234_v35 = vsel %vm1193_vm6, 1.0, %v2641_v42  ;;  %v2238_v36 = vsel %vm1197_vm7, 1.0, %v2641_v42  ;;  %vm240_vm8 = vcmp.eq.s32.totalorder %v2782_v9, %v2804_v27 }
  0x55   : > { %vm244_vm9 = vcmp.eq.s32.totalorder %v2785_v10, %v2804_v27  ;;  %vm656_vm10 = vcmp.eq.s32.totalorder %v2782_v9, %v2812_v31  ;;  %2370 = vmatpush1.bf16.msra.mxu0 %v2369_v24  ;;  %v1577_v37 = vadd.f32 %v2234_v35, %v1033_v25  ;;  %v1985_v8 = vsel %vm240_vm8, 1.0, %v2641_v42 }
  0x56   : > { %v1581_v43 = vadd.f32 %v2238_v36, %v1037_v34  ;;  %v1989_v44 = vsel %vm244_vm9, 1.0, %v2641_v42  ;;  %vm660_vm11 = vcmp.eq.s32.totalorder %v2785_v10, %v2812_v31  ;;  %v2113_v45 = vsel %vm656_vm10, 1.0, %v2641_v42 }
  0x57   : > { %vm1200_vm12 = vcmp.eq.s32.totalorder %v2782_v9, %v2828_v39  ;;  %vm1204_vm13 = vcmp.eq.s32.totalorder %v2785_v10, %v2828_v39  ;;  %v2117_v47 = vsel %vm660_vm11, 1.0, %v2641_v42  ;;  %v1040_v48 = vsub.f32 %v1985_v8, %v2113_v45 }
  0x58   : > { %v2433_v46 = vpack.c.bf16 %v1581_v43, %v1577_v37  ;;  %v2241_v49 = vsel %vm1200_vm12, 1.0, %v2641_v42  ;;  %v1044_v50 = vsub.f32 %v1989_v44, %v2117_v47  ;;  %v2245_v51 = vsel %vm1204_vm13, 1.0, %v2641_v42 }
  0x59   : > { %vm242_vm14 = vcmp.eq.s32.totalorder %v2782_v9, %v2808_v29  ;;  %vm246_vm15 = vcmp.eq.s32.totalorder %v2785_v10, %v2808_v29  ;;  %v1584_v52 = vadd.f32 %v2241_v49, %v1040_v48  ;;  %vm658_vm0 = vcmp.eq.s32.totalorder %v2782_v9, %v2816_v33 }
  0x5a   : > { %2434 = vmatpush1.bf16.msra.mxu1 %v2433_v46  ;;  %v1987_v53 = vsel %vm242_vm14, 1.0, %v2641_v42  ;;  %v1991_v54 = vsel %vm246_vm15, 1.0, %v2641_v42  ;;  %v1588_v55 = vadd.f32 %v2245_v51, %v1044_v50  ;;  %vm662_vm1 = vcmp.eq.s32.totalorder %v2785_v10, %v2816_v33 }
  0x5b   : > { %v2115_v56 = vsel %vm658_vm0, 1.0, %v2641_v42  ;;  %vm1202_vm2 = vcmp.eq.s32.totalorder %v2782_v9, %v2832_v41  ;;  %v2119_v57 = vsel %vm662_vm1, 1.0, %v2641_v42  ;;  %vm1206_vm3 = vcmp.eq.s32.totalorder %v2785_v10, %v2832_v41 }
  0x5c   : > { %v1042_v58 = vsub.f32 %v1987_v53, %v2115_v56  ;;  %v2243_v59 = vsel %vm1202_vm2, 1.0, %v2641_v42  ;;  %v2371_v60 = vpack.c.bf16 %v1588_v55, %v1584_v52  ;;  %v1046_v61 = vsub.f32 %v1991_v54, %v2119_v57 }
  0x5d   : > { %v2247_v62 = vsel %vm1206_vm3, 1.0, %v2641_v42  ;;  %vm239_vm4 = vcmp.eq.s32.totalorder %v2782_v9, %v2802_v26  ;;  %vm243_vm5 = vcmp.eq.s32.totalorder %v2785_v10, %v2802_v26  ;;  %vm655_vm6 = vcmp.eq.s32.totalorder %v2782_v9, %v2810_v30 }
  0x5e   : > { %v1586_v63 = vadd.f32 %v2243_v59, %v1042_v58  ;;  %v1984_v0 = vsel %vm239_vm4, 1.0, %v2641_v42  ;;  %2372 = vmatprep.subr.bf16.mxu0 %v2371_v60  ;;  %v1590_v2 = vadd.f32 %v2247_v62, %v1046_v61  ;;  %v1988_v3 = vsel %vm243_vm5, 1.0, %v2641_v42 }
  0x5f   : > { %vm659_vm7 = vcmp.eq.s32.totalorder %v2785_v10, %v2810_v30  ;;  %v2112_v4 = vsel %vm655_vm6, 1.0, %v2641_v42  ;;  %vm1199_vm8 = vcmp.eq.s32.totalorder %v2782_v9, %v2826_v38  ;;  %vm1203_vm9 = vcmp.eq.s32.totalorder %v2785_v10, %v2826_v38 }
  0x60   : > { %v2116_v5 = vsel %vm659_vm7, 1.0, %v2641_v42  ;;  %v1039_v6 = vsub.f32 %v1984_v0, %v2112_v4  ;;  %v2435_v7 = vpack.c.bf16 %v1590_v2, %v1586_v63  ;;  %v2240_v15 = vsel %vm1199_vm8, 1.0, %v2641_v42 }
  0x61   : > { %v1043_v14 = vsub.f32 %v1988_v3, %v2116_v5  ;;  %v2244_v18 = vsel %vm1203_vm9, 1.0, %v2641_v42  ;;  %vm241_vm10 = vcmp.eq.s32.totalorder %v2782_v9, %v2806_v28  ;;  %vm245_vm11 = vcmp.eq.s32.totalorder %v2785_v10, %v2806_v28 }
  0x62   : > { %v1583_v19 = vadd.f32 %v2240_v15, %v1039_v6  ;;  %vm657_vm12 = vcmp.eq.s32.totalorder %v2782_v9, %v2814_v32  ;;  %2436 = vmatprep.subr.bf16.mxu1 %v2435_v7  ;;  %v1986_v21 = vsel %vm241_vm10, 1.0, %v2641_v42  ;;  %v1990_v22 = vsel %vm245_vm11, 1.0, %v2641_v42 }
  0x63   : > { %v1587_v20 = vadd.f32 %v2244_v18, %v1043_v14  ;;  %vm661_vm13 = vcmp.eq.s32.totalorder %v2785_v10, %v2814_v32  ;;  %v2114_v23 = vsel %vm657_vm12, 1.0, %v2641_v42  ;;  %vm1201_vm14 = vcmp.eq.s32.totalorder %v2782_v9, %v2830_v40 }
  0x64   : > { %v2118_v24 = vsel %vm661_vm13, 1.0, %v2641_v42  ;;  %vm1205_vm15 = vcmp.eq.s32.totalorder %v2785_v10, %v2830_v40  ;;  %v1041_v34 = vsub.f32 %v1986_v21, %v2114_v23  ;;  %v2242_v36 = vsel %vm1201_vm14, 1.0, %v2641_v42 }
  0x65   : > { %v2373_v25 = vpack.c.bf16 %v1587_v20, %v1583_v19  ;;  %v1045_v35 = vsub.f32 %v1990_v22, %v2118_v24  ;;  %v2246_v37 = vsel %vm1205_vm15, 1.0, %v2641_v42  ;;  %vm248_vm0 = vcmp.eq.s32.totalorder %v2788_v11, %v2804_v27 }
  0x66   : > { %vm252_vm1 = vcmp.eq.s32.totalorder %v2791_v12, %v2804_v27  ;;  %vm664_vm2 = vcmp.eq.s32.totalorder %v2788_v11, %v2812_v31  ;;  %v1585_v9 = vadd.f32 %v2242_v36, %v1041_v34  ;;  %v1993_v10 = vsel %vm248_vm0, 1.0, %v2641_v42 }
  0x67   : > { %2374 = vmatpush1.bf16.msra.mxu0 %v2373_v25  ;;  %v1589_v43 = vadd.f32 %v2246_v37, %v1045_v35  ;;  %v1997_v8 = vsel %vm252_vm1, 1.0, %v2641_v42  ;;  %vm668_vm3 = vcmp.eq.s32.totalorder %v2791_v12, %v2812_v31  ;;  %v2121_v44 = vsel %vm664_vm2, 1.0, %v2641_v42 }
  0x68   : > { %vm1208_vm4 = vcmp.eq.s32.totalorder %v2788_v11, %v2828_v39  ;;  %vm1212_vm5 = vcmp.eq.s32.totalorder %v2791_v12, %v2828_v39  ;;  %v2125_v46 = vsel %vm668_vm3, 1.0, %v2641_v42  ;;  %v1048_v47 = vsub.f32 %v1993_v10, %v2121_v44 }
  0x69   : > { %v2437_v45 = vpack.c.bf16 %v1589_v43, %v1585_v9  ;;  %v2249_v48 = vsel %vm1208_vm4, 1.0, %v2641_v42  ;;  %v1052_v49 = vsub.f32 %v1997_v8, %v2125_v46  ;;  %v2253_v50 = vsel %vm1212_vm5, 1.0, %v2641_v42 }
  0x6a   : > { %vm250_vm6 = vcmp.eq.s32.totalorder %v2788_v11, %v2808_v29  ;;  %vm254_vm7 = vcmp.eq.s32.totalorder %v2791_v12, %v2808_v29  ;;  %v1592_v51 = vadd.f32 %v2249_v48, %v1048_v47  ;;  %vm666_vm8 = vcmp.eq.s32.totalorder %v2788_v11, %v2816_v33 }
  0x6b   : > { %2438 = vmatpush1.bf16.msra.mxu1 %v2437_v45  ;;  %v1995_v52 = vsel %vm250_vm6, 1.0, %v2641_v42  ;;  %v1999_v53 = vsel %vm254_vm7, 1.0, %v2641_v42  ;;  %v1596_v54 = vadd.f32 %v2253_v50, %v1052_v49  ;;  %vm670_vm9 = vcmp.eq.s32.totalorder %v2791_v12, %v2816_v33 }
  0x6c   : > { %v2123_v55 = vsel %vm666_vm8, 1.0, %v2641_v42  ;;  %vm1210_vm10 = vcmp.eq.s32.totalorder %v2788_v11, %v2832_v41  ;;  %v2127_v56 = vsel %vm670_vm9, 1.0, %v2641_v42  ;;  %vm1214_vm11 = vcmp.eq.s32.totalorder %v2791_v12, %v2832_v41 }
  0x6d   : > { %v1050_v57 = vsub.f32 %v1995_v52, %v2123_v55  ;;  %v2251_v58 = vsel %vm1210_vm10, 1.0, %v2641_v42  ;;  %v2375_v59 = vpack.c.bf16 %v1596_v54, %v1592_v51  ;;  %v1054_v60 = vsub.f32 %v1999_v53, %v2127_v56 }
  0x6e   : > { %v2255_v61 = vsel %vm1214_vm11, 1.0, %v2641_v42  ;;  %vm247_vm12 = vcmp.eq.s32.totalorder %v2788_v11, %v2802_v26  ;;  %vm251_vm13 = vcmp.eq.s32.totalorder %v2791_v12, %v2802_v26  ;;  %vm663_vm14 = vcmp.eq.s32.totalorder %v2788_v11, %v2810_v30 }
  0x6f   : > { %v1594_v62 = vadd.f32 %v2251_v58, %v1050_v57  ;;  %v1992_v63 = vsel %vm247_vm12, 1.0, %v2641_v42  ;;  %2376 = vmatprep.subr.bf16.mxu0 %v2375_v59  ;;  %v1598_v0 = vadd.f32 %v2255_v61, %v1054_v60  ;;  %v1996_v2 = vsel %vm251_vm13, 1.0, %v2641_v42 }
  0x70   : > { %vm667_vm15 = vcmp.eq.s32.totalorder %v2791_v12, %v2810_v30  ;;  %v2120_v3 = vsel %vm663_vm14, 1.0, %v2641_v42  ;;  %vm1207_vm0 = vcmp.eq.s32.totalorder %v2788_v11, %v2826_v38  ;;  %vm1211_vm1 = vcmp.eq.s32.totalorder %v2791_v12, %v2826_v38 }
  0x71   : > { %v2124_v4 = vsel %vm667_vm15, 1.0, %v2641_v42  ;;  %v1047_v5 = vsub.f32 %v1992_v63, %v2120_v3  ;;  %v2439_v6 = vpack.c.bf16 %v1598_v0, %v1594_v62  ;;  %v2248_v14 = vsel %vm1207_vm0, 1.0, %v2641_v42 }
  0x72   : > { %v1051_v7 = vsub.f32 %v1996_v2, %v2124_v4  ;;  %v2252_v15 = vsel %vm1211_vm1, 1.0, %v2641_v42  ;;  %vm249_vm2 = vcmp.eq.s32.totalorder %v2788_v11, %v2806_v28  ;;  %vm253_vm3 = vcmp.eq.s32.totalorder %v2791_v12, %v2806_v28 }
  0x73   : > { %v1591_v18 = vadd.f32 %v2248_v14, %v1047_v5  ;;  %vm665_vm4 = vcmp.eq.s32.totalorder %v2788_v11, %v2814_v32  ;;  %2440 = vmatprep.subr.bf16.mxu1 %v2439_v6  ;;  %v1994_v20 = vsel %vm249_vm2, 1.0, %v2641_v42  ;;  %v1998_v21 = vsel %vm253_vm3, 1.0, %v2641_v42 }
  0x74   : > { %v1595_v19 = vadd.f32 %v2252_v15, %v1051_v7  ;;  %vm669_vm5 = vcmp.eq.s32.totalorder %v2791_v12, %v2814_v32  ;;  %v2122_v22 = vsel %vm665_vm4, 1.0, %v2641_v42  ;;  %vm1209_vm6 = vcmp.eq.s32.totalorder %v2788_v11, %v2830_v40 }
  0x75   : > { %v2126_v23 = vsel %vm669_vm5, 1.0, %v2641_v42  ;;  %vm1213_vm7 = vcmp.eq.s32.totalorder %v2791_v12, %v2830_v40  ;;  %v1049_v25 = vsub.f32 %v1994_v20, %v2122_v22  ;;  %v2250_v35 = vsel %vm1209_vm6, 1.0, %v2641_v42 }
  0x76   : > { %v2377_v24 = vpack.c.bf16 %v1595_v19, %v1591_v18  ;;  %v1053_v34 = vsub.f32 %v1998_v21, %v2126_v23  ;;  %v2254_v36 = vsel %vm1213_vm7, 1.0, %v2641_v42  ;;  %vm256_vm8 = vcmp.eq.s32.totalorder %v2794_v13, %v2804_v27 }
  0x77   : > { %vm260_vm9 = vcmp.eq.s32.totalorder %v2797_v16, %v2804_v27  ;;  %vm672_vm10 = vcmp.eq.s32.totalorder %v2794_v13, %v2812_v31  ;;  %v1593_v11 = vadd.f32 %v2250_v35, %v1049_v25  ;;  %v2001_v12 = vsel %vm256_vm8, 1.0, %v2641_v42 }
  0x78   : > { %2378 = vmatpush1.bf16.msra.mxu0 %v2377_v24  ;;  %v1597_v37 = vadd.f32 %v2254_v36, %v1053_v34  ;;  %v2005_v9 = vsel %vm260_vm9, 1.0, %v2641_v42  ;;  %vm676_vm11 = vcmp.eq.s32.totalorder %v2797_v16, %v2812_v31  ;;  %v2129_v43 = vsel %vm672_vm10, 1.0, %v2641_v42 }
  0x79   : > { %vm1216_vm12 = vcmp.eq.s32.totalorder %v2794_v13, %v2828_v39  ;;  %vm1220_vm13 = vcmp.eq.s32.totalorder %v2797_v16, %v2828_v39  ;;  %v2133_v8 = vsel %vm676_vm11, 1.0, %v2641_v42  ;;  %v1056_v44 = vsub.f32 %v2001_v12, %v2129_v43 }
  0x7a   : > { %v2441_v10 = vpack.c.bf16 %v1597_v37, %v1593_v11  ;;  %v2257_v45 = vsel %vm1216_vm12, 1.0, %v2641_v42  ;;  %v1060_v46 = vsub.f32 %v2005_v9, %v2133_v8  ;;  %v2261_v47 = vsel %vm1220_vm13, 1.0, %v2641_v42 }
  0x7b   : > { %vm258_vm14 = vcmp.eq.s32.totalorder %v2794_v13, %v2808_v29  ;;  %vm262_vm15 = vcmp.eq.s32.totalorder %v2797_v16, %v2808_v29  ;;  %v1600_v48 = vadd.f32 %v2257_v45, %v1056_v44  ;;  %vm674_vm0 = vcmp.eq.s32.totalorder %v2794_v13, %v2816_v33 }
  0x7c   : > { %2442 = vmatpush1.bf16.msra.mxu1 %v2441_v10  ;;  %v2003_v49 = vsel %vm258_vm14, 1.0, %v2641_v42  ;;  %v2007_v50 = vsel %vm262_vm15, 1.0, %v2641_v42  ;;  %v1604_v51 = vadd.f32 %v2261_v47, %v1060_v46  ;;  %vm678_vm1 = vcmp.eq.s32.totalorder %v2797_v16, %v2816_v33 }
  0x7d   : > { %v2131_v52 = vsel %vm674_vm0, 1.0, %v2641_v42  ;;  %vm1218_vm2 = vcmp.eq.s32.totalorder %v2794_v13, %v2832_v41  ;;  %v2135_v53 = vsel %vm678_vm1, 1.0, %v2641_v42  ;;  %vm1222_vm3 = vcmp.eq.s32.totalorder %v2797_v16, %v2832_v41 }
  0x7e   : > { %v1058_v54 = vsub.f32 %v2003_v49, %v2131_v52  ;;  %v2259_v55 = vsel %vm1218_vm2, 1.0, %v2641_v42  ;;  %v2379_v56 = vpack.c.bf16 %v1604_v51, %v1600_v48  ;;  %v1062_v57 = vsub.f32 %v2007_v50, %v2135_v53 }
  0x7f   : > { %v2263_v58 = vsel %vm1222_vm3, 1.0, %v2641_v42  ;;  %vm255_vm4 = vcmp.eq.s32.totalorder %v2794_v13, %v2802_v26  ;;  %vm259_vm5 = vcmp.eq.s32.totalorder %v2797_v16, %v2802_v26  ;;  %vm671_vm6 = vcmp.eq.s32.totalorder %v2794_v13, %v2810_v30 }
  0x80   : > { %v1602_v59 = vadd.f32 %v2259_v55, %v1058_v54  ;;  %v2000_v60 = vsel %vm255_vm4, 1.0, %v2641_v42  ;;  %2380 = vmatprep.subr.bf16.mxu0 %v2379_v56  ;;  %v1606_v61 = vadd.f32 %v2263_v58, %v1062_v57  ;;  %v2004_v62 = vsel %vm259_vm5, 1.0, %v2641_v42 }
  0x81   : > { %vm675_vm7 = vcmp.eq.s32.totalorder %v2797_v16, %v2810_v30  ;;  %v2128_v63 = vsel %vm671_vm6, 1.0, %v2641_v42  ;;  %vm1215_vm8 = vcmp.eq.s32.totalorder %v2794_v13, %v2826_v38  ;;  %vm1219_vm9 = vcmp.eq.s32.totalorder %v2797_v16, %v2826_v38 }
  0x82   : > { %v2132_v0 = vsel %vm675_vm7, 1.0, %v2641_v42  ;;  %v1055_v2 = vsub.f32 %v2000_v60, %v2128_v63  ;;  %v2443_v3 = vpack.c.bf16 %v1606_v61, %v1602_v59  ;;  %v2256_v5 = vsel %vm1215_vm8, 1.0, %v2641_v42 }
  0x83   : > { %v1059_v4 = vsub.f32 %v2004_v62, %v2132_v0  ;;  %v2260_v6 = vsel %vm1219_vm9, 1.0, %v2641_v42  ;;  %vm257_vm10 = vcmp.eq.s32.totalorder %v2794_v13, %v2806_v28  ;;  %vm261_vm11 = vcmp.eq.s32.totalorder %v2797_v16, %v2806_v28 }
  0x84   : > { %v1599_v7 = vadd.f32 %v2256_v5, %v1055_v2  ;;  %vm673_vm12 = vcmp.eq.s32.totalorder %v2794_v13, %v2814_v32  ;;  %2444 = vmatprep.subr.bf16.mxu1 %v2443_v3  ;;  %v2002_v15 = vsel %vm257_vm10, 1.0, %v2641_v42  ;;  %v2006_v18 = vsel %vm261_vm11, 1.0, %v2641_v42 }
  0x85   : > { %v1603_v14 = vadd.f32 %v2260_v6, %v1059_v4  ;;  %vm677_vm13 = vcmp.eq.s32.totalorder %v2797_v16, %v2814_v32  ;;  %v2130_v19 = vsel %vm673_vm12, 1.0, %v2641_v42  ;;  %vm1217_vm14 = vcmp.eq.s32.totalorder %v2794_v13, %v2830_v40 }
  0x86   : > { %v2134_v20 = vsel %vm677_vm13, 1.0, %v2641_v42  ;;  %vm1221_vm15 = vcmp.eq.s32.totalorder %v2797_v16, %v2830_v40  ;;  %v1057_v22 = vsub.f32 %v2002_v15, %v2130_v19  ;;  %v2258_v24 = vsel %vm1217_vm14, 1.0, %v2641_v42 }
  0x87   : > { %v2381_v21 = vpack.c.bf16 %v1603_v14, %v1599_v7  ;;  %v1061_v23 = vsub.f32 %v2006_v18, %v2134_v20  ;;  %v2262_v25 = vsel %vm1221_vm15, 1.0, %v2641_v42  ;;  %v3115_v34 = vadd.s32 72, %v2770_v1 }
  0x88   : > { %vm264_vm0 = vcmp.eq.s32.totalorder %v2800_v17, %v2804_v27  ;;  %vm680_vm1 = vcmp.eq.s32.totalorder %v2800_v17, %v2812_v31  ;;  %v1601_v13 = vadd.f32 %v2258_v24, %v1057_v22  ;;  %vm1224_vm4 = vcmp.eq.s32.totalorder %v2800_v17, %v2828_v39 }
  0x89   : > { %2382 = vmatpush1.bf16.msra.mxu0 %v2381_v21  ;;  %v1605_v35 = vadd.f32 %v2262_v25, %v1061_v23  ;;  %v2009_v16 = vsel %vm264_vm0, 1.0, %v2641_v42  ;;  %v2137_v36 = vsel %vm680_vm1, 1.0, %v2641_v42  ;;  %vm268_vm2 = vcmp.eq.s32.totalorder %v3115_v34, %v2804_v27 }
  0x8a   : > { %vm684_vm3 = vcmp.eq.s32.totalorder %v3115_v34, %v2812_v31  ;;  %v1064_v11 = vsub.f32 %v2009_v16, %v2137_v36  ;;  %v2013_v12 = vsel %vm268_vm2, 1.0, %v2641_v42  ;;  %vm1228_vm5 = vcmp.eq.s32.totalorder %v3115_v34, %v2828_v39 }
  0x8b   : > { %v2445_v37 = vpack.c.bf16 %v1605_v35, %v1601_v13  ;;  %v2141_v9 = vsel %vm684_vm3, 1.0, %v2641_v42  ;;  %v2265_v10 = vsel %vm1224_vm4, 1.0, %v2641_v42  ;;  %v2269_v8 = vsel %vm1228_vm5, 1.0, %v2641_v42 }
  0x8c   : > { %v1068_v43 = vsub.f32 %v2013_v12, %v2141_v9  ;;  %vm266_vm6 = vcmp.eq.s32.totalorder %v2800_v17, %v2808_v29  ;;  %v1608_v44 = vadd.f32 %v2265_v10, %v1064_v11  ;;  %vm270_vm7 = vcmp.eq.s32.totalorder %v3115_v34, %v2808_v29 }
  0x8d   : > { %2446 = vmatpush1.bf16.msra.mxu1 %v2445_v37  ;;  %v2011_v45 = vsel %vm266_vm6, 1.0, %v2641_v42  ;;  %vm682_vm8 = vcmp.eq.s32.totalorder %v2800_v17, %v2816_v33  ;;  %v2015_v47 = vsel %vm270_vm7, 1.0, %v2641_v42  ;;  %vm686_vm9 = vcmp.eq.s32.totalorder %v3115_v34, %v2816_v33 }
  0x8e   : > { %v1612_v46 = vadd.f32 %v2269_v8, %v1068_v43  ;;  %v2139_v48 = vsel %vm682_vm8, 1.0, %v2641_v42  ;;  %v2143_v49 = vsel %vm686_vm9, 1.0, %v2641_v42  ;;  %vm1226_vm10 = vcmp.eq.s32.totalorder %v2800_v17, %v2832_v41 }
  0x8f   : > { %v1066_v50 = vsub.f32 %v2011_v45, %v2139_v48  ;;  %vm1230_vm11 = vcmp.eq.s32.totalorder %v3115_v34, %v2832_v41  ;;  %v1070_v52 = vsub.f32 %v2015_v47, %v2143_v49  ;;  %v2267_v53 = vsel %vm1226_vm10, 1.0, %v2641_v42 }
  0x90   : > { %v2383_v51 = vpack.c.bf16 %v1612_v46, %v1608_v44  ;;  %v2271_v54 = vsel %vm1230_vm11, 1.0, %v2641_v42  ;;  %vm263_vm12 = vcmp.eq.s32.totalorder %v2800_v17, %v2802_v26  ;;  %vm267_vm13 = vcmp.eq.s32.totalorder %v3115_v34, %v2802_v26 }
  0x91   : > { %v1610_v55 = vadd.f32 %v2267_v53, %v1066_v50  ;;  %vm679_vm14 = vcmp.eq.s32.totalorder %v2800_v17, %v2810_v30  ;;  %v1614_v56 = vadd.f32 %v2271_v54, %v1070_v52  ;;  %v2008_v57 = vsel %vm263_vm12, 1.0, %v2641_v42 }
  0x92   : > { %2384 = vmatprep.subr.bf16.mxu0 %v2383_v51  ;;  %v2012_v58 = vsel %vm267_vm13, 1.0, %v2641_v42  ;;  %vm683_vm15 = vcmp.eq.s32.totalorder %v3115_v34, %v2810_v30  ;;  %v2136_v59 = vsel %vm679_vm14, 1.0, %v2641_v42  ;;  %vm1223_vm0 = vcmp.eq.s32.totalorder %v2800_v17, %v2826_v38 }
  0x93   : > { %v2140_v60 = vsel %vm683_vm15, 1.0, %v2641_v42  ;;  %vm1227_vm1 = vcmp.eq.s32.totalorder %v3115_v34, %v2826_v38  ;;  %v2447_v61 = vpack.c.bf16 %v1614_v56, %v1610_v55  ;;  %v1063_v62 = vsub.f32 %v2008_v57, %v2136_v59 }
  0x94   : > { %v1067_v63 = vsub.f32 %v2012_v58, %v2140_v60  ;;  %v2264_v0 = vsel %vm1223_vm0, 1.0, %v2641_v42  ;;  %v2268_v2 = vsel %vm1227_vm1, 1.0, %v2641_v42  ;;  %vm265_vm2 = vcmp.eq.s32.totalorder %v2800_v17, %v2806_v28 }
  0x95   : > { %vm269_vm3 = vcmp.eq.s32.totalorder %v3115_v34, %v2806_v28  ;;  %vm681_vm4 = vcmp.eq.s32.totalorder %v2800_v17, %v2814_v32  ;;  %2448 = vmatprep.subr.bf16.mxu1 %v2447_v61  ;;  %v1607_v3 = vadd.f32 %v2264_v0, %v1063_v62  ;;  %v2010_v5 = vsel %vm265_vm2, 1.0, %v2641_v42 }
  0x96   : > { %v1611_v4 = vadd.f32 %v2268_v2, %v1067_v63  ;;  %v2014_v6 = vsel %vm269_vm3, 1.0, %v2641_v42  ;;  %vm685_vm5 = vcmp.eq.s32.totalorder %v3115_v34, %v2814_v32  ;;  %v2138_v7 = vsel %vm681_vm4, 1.0, %v2641_v42 }
  0x97   : > { %vm1225_vm6 = vcmp.eq.s32.totalorder %v2800_v17, %v2830_v40  ;;  %vm1229_vm7 = vcmp.eq.s32.totalorder %v3115_v34, %v2830_v40  ;;  %v2142_v15 = vsel %vm685_vm5, 1.0, %v2641_v42  ;;  %v1065_v18 = vsub.f32 %v2010_v5, %v2138_v7 }
  0x98   : > { %v2385_v14 = vpack.c.bf16 %v1611_v4, %v1607_v3  ;;  %v2266_v19 = vsel %vm1225_vm6, 1.0, %v2641_v42  ;;  %v1069_v20 = vsub.f32 %v2014_v6, %v2142_v15  ;;  %v2270_v21 = vsel %vm1229_vm7, 1.0, %v2641_v42 }
  0x99   : > { %v3190_v22 = vadd.s32 80, %v2770_v1  ;;  %v3193_v23 = vadd.s32 88, %v2770_v1  ;;  %v1609_v17 = vadd.f32 %v2266_v19, %v1065_v18  ;;  %v3196_v24 = vadd.s32 96, %v2770_v1 }
  0x9a   : > { %2386 = vmatpush1.bf16.msra.mxu0 %v2385_v14  ;;  %v3199_v25 = vadd.s32 104, %v2770_v1  ;;  %v3202_v34 = vadd.s32 112, %v2770_v1  ;;  %v1613_v13 = vadd.f32 %v2270_v21, %v1069_v20 }
  0x9b   : > { %vm272_vm8 = vcmp.eq.s32.totalorder %v3190_v22, %v2804_v27  ;;  %vm276_vm9 = vcmp.eq.s32.totalorder %v3193_v23, %v2804_v27  ;;  %vm688_vm10 = vcmp.eq.s32.totalorder %v3190_v22, %v2812_v31  ;;  %vm692_vm11 = vcmp.eq.s32.totalorder %v3193_v23, %v2812_v31 }
  0x9c   : > { %v2017_v35 = vsel %vm272_vm8, 1.0, %v2641_v42  ;;  %v2021_v16 = vsel %vm276_vm9, 1.0, %v2641_v42  ;;  %v2145_v36 = vsel %vm688_vm10, 1.0, %v2641_v42  ;;  %v2449_v11 = vpack.c.bf16 %v1613_v13, %v1609_v17 }
  0x9d   : > { %v2149_v37 = vsel %vm692_vm11, 1.0, %v2641_v42  ;;  %v1072_v12 = vsub.f32 %v2017_v35, %v2145_v36  ;;  %vm1232_vm12 = vcmp.eq.s32.totalorder %v3190_v22, %v2828_v39  ;;  %vm1236_vm13 = vcmp.eq.s32.totalorder %v3193_v23, %v2828_v39 }
  0x9e   : > { %v1076_v9 = vsub.f32 %v2021_v16, %v2149_v37  ;;  %v2273_v43 = vsel %vm1232_vm12, 1.0, %v2641_v42  ;;  %vm274_vm14 = vcmp.eq.s32.totalorder %v3190_v22, %v2808_v29  ;;  %2450 = vmatpush1.bf16.msra.mxu1 %v2449_v11  ;;  %v2277_v10 = vsel %vm1236_vm13, 1.0, %v2641_v42 }
  0x9f   : > { %v1616_v8 = vadd.f32 %v2273_v43, %v1072_v12  ;;  %vm278_vm15 = vcmp.eq.s32.totalorder %v3193_v23, %v2808_v29  ;;  %v2019_v44 = vsel %vm274_vm14, 1.0, %v2641_v42  ;;  %vm690_vm0 = vcmp.eq.s32.totalorder %v3190_v22, %v2816_v33 }
  0xa0   : > { %v1620_v45 = vadd.f32 %v2277_v10, %v1076_v9  ;;  %v2023_v46 = vsel %vm278_vm15, 1.0, %v2641_v42  ;;  %vm694_vm1 = vcmp.eq.s32.totalorder %v3193_v23, %v2816_v33  ;;  %v2147_v47 = vsel %vm690_vm0, 1.0, %v2641_v42 }
  0xa1   : > { %v2151_v48 = vsel %vm694_vm1, 1.0, %v2641_v42  ;;  %vm1234_vm2 = vcmp.eq.s32.totalorder %v3190_v22, %v2832_v41  ;;  %vm1238_vm3 = vcmp.eq.s32.totalorder %v3193_v23, %v2832_v41  ;;  %v1074_v50 = vsub.f32 %v2019_v44, %v2147_v47 }
  0xa2   : > { %v2387_v49 = vpack.c.bf16 %v1620_v45, %v1616_v8  ;;  %v1078_v51 = vsub.f32 %v2023_v46, %v2151_v48  ;;  %v2275_v52 = vsel %vm1234_vm2, 1.0, %v2641_v42  ;;  %v2279_v53 = vsel %vm1238_vm3, 1.0, %v2641_v42 }
  0xa3   : > { %vm271_vm4 = vcmp.eq.s32.totalorder %v3190_v22, %v2802_v26  ;;  %vm275_vm5 = vcmp.eq.s32.totalorder %v3193_v23, %v2802_v26  ;;  %vm687_vm6 = vcmp.eq.s32.totalorder %v3190_v22, %v2810_v30  ;;  %v1618_v54 = vadd.f32 %v2275_v52, %v1074_v50 }
  0xa4   : > { %2388 = vmatprep.subr.bf16.mxu0 %v2387_v49  ;;  %v1622_v55 = vadd.f32 %v2279_v53, %v1078_v51  ;;  %v2016_v56 = vsel %vm271_vm4, 1.0, %v2641_v42  ;;  %v2020_v57 = vsel %vm275_vm5, 1.0, %v2641_v42  ;;  %vm691_vm7 = vcmp.eq.s32.totalorder %v3193_v23, %v2810_v30 }
  0xa5   : > { %v2144_v58 = vsel %vm687_vm6, 1.0, %v2641_v42  ;;  %vm1231_vm8 = vcmp.eq.s32.totalorder %v3190_v22, %v2826_v38  ;;  %vm1235_vm9 = vcmp.eq.s32.totalorder %v3193_v23, %v2826_v38  ;;  %v2148_v60 = vsel %vm691_vm7, 1.0, %v2641_v42 }
  0xa6   : > { %v2451_v59 = vpack.c.bf16 %v1622_v55, %v1618_v54  ;;  %v1071_v61 = vsub.f32 %v2016_v56, %v2144_v58  ;;  %v2272_v62 = vsel %vm1231_vm8, 1.0, %v2641_v42  ;;  %v1075_v63 = vsub.f32 %v2020_v57, %v2148_v60 }
  0xa7   : > { %v2276_v0 = vsel %vm1235_vm9, 1.0, %v2641_v42  ;;  %vm273_vm10 = vcmp.eq.s32.totalorder %v3190_v22, %v2806_v28  ;;  %vm277_vm11 = vcmp.eq.s32.totalorder %v3193_v23, %v2806_v28  ;;  %vm689_vm12 = vcmp.eq.s32.totalorder %v3190_v22, %v2814_v32 }
  0xa8   : > { %2452 = vmatprep.subr.bf16.mxu1 %v2451_v59  ;;  %v1615_v2 = vadd.f32 %v2272_v62, %v1071_v61  ;;  %v2018_v3 = vsel %vm273_vm10, 1.0, %v2641_v42  ;;  %v2022_v4 = vsel %vm277_vm11, 1.0, %v2641_v42  ;;  %v1619_v5 = vadd.f32 %v2276_v0, %v1075_v63 }
  0xa9   : > { %vm693_vm13 = vcmp.eq.s32.totalorder %v3193_v23, %v2814_v32  ;;  %v2146_v6 = vsel %vm689_vm12, 1.0, %v2641_v42  ;;  %vm1233_vm14 = vcmp.eq.s32.totalorder %v3190_v22, %v2830_v40  ;;  %vm1237_vm15 = vcmp.eq.s32.totalorder %v3193_v23, %v2830_v40 }
  0xaa   : > { %v2150_v7 = vsel %vm693_vm13, 1.0, %v2641_v42  ;;  %v1073_v14 = vsub.f32 %v2018_v3, %v2146_v6  ;;  %v2274_v15 = vsel %vm1233_vm14, 1.0, %v2641_v42  ;;  %v2389_v18 = vpack.c.bf16 %v1619_v5, %v1615_v2 }
  0xab   : > { %v1077_v19 = vsub.f32 %v2022_v4, %v2150_v7  ;;  %v2278_v20 = vsel %vm1237_vm15, 1.0, %v2641_v42  ;;  %vm280_vm0 = vcmp.eq.s32.totalorder %v3196_v24, %v2804_v27  ;;  %vm284_vm1 = vcmp.eq.s32.totalorder %v3199_v25, %v2804_v27 }
  0xac   : > { %v1617_v21 = vadd.f32 %v2274_v15, %v1073_v14  ;;  %v2025_v22 = vsel %vm280_vm0, 1.0, %v2641_v42  ;;  %vm696_vm2 = vcmp.eq.s32.totalorder %v3196_v24, %v2812_v31  ;;  %2390 = vmatpush1.bf16.msra.mxu0 %v2389_v18  ;;  %v2029_v17 = vsel %vm284_vm1, 1.0, %v2641_v42 }
  0xad   : > { %v1621_v23 = vadd.f32 %v2278_v20, %v1077_v19  ;;  %vm700_vm3 = vcmp.eq.s32.totalorder %v3199_v25, %v2812_v31  ;;  %v2153_v13 = vsel %vm696_vm2, 1.0, %v2641_v42  ;;  %vm1240_vm4 = vcmp.eq.s32.totalorder %v3196_v24, %v2828_v39 }
  0xae   : > { %v2157_v35 = vsel %vm700_vm3, 1.0, %v2641_v42  ;;  %v1080_v16 = vsub.f32 %v2025_v22, %v2153_v13  ;;  %vm1244_vm5 = vcmp.eq.s32.totalorder %v3199_v25, %v2828_v39  ;;  %v2281_v37 = vsel %vm1240_vm4, 1.0, %v2641_v42 }
  0xaf   : > { %v2453_v36 = vpack.c.bf16 %v1621_v23, %v1617_v21  ;;  %v1084_v11 = vsub.f32 %v2029_v17, %v2157_v35  ;;  %v2285_v12 = vsel %vm1244_vm5, 1.0, %v2641_v42  ;;  %vm282_vm6 = vcmp.eq.s32.totalorder %v3196_v24, %v2808_v29 }
  0xb0   : > { %v1624_v9 = vadd.f32 %v2281_v37, %v1080_v16  ;;  %vm286_vm7 = vcmp.eq.s32.totalorder %v3199_v25, %v2808_v29  ;;  %vm698_vm8 = vcmp.eq.s32.totalorder %v3196_v24, %v2816_v33  ;;  %v2027_v10 = vsel %vm282_vm6, 1.0, %v2641_v42 }
  0xb1   : > { %2454 = vmatpush1.bf16.msra.mxu1 %v2453_v36  ;;  %v1628_v43 = vadd.f32 %v2285_v12, %v1084_v11  ;;  %v2031_v8 = vsel %vm286_vm7, 1.0, %v2641_v42  ;;  %vm702_vm9 = vcmp.eq.s32.totalorder %v3199_v25, %v2816_v33  ;;  %v2155_v44 = vsel %vm698_vm8, 1.0, %v2641_v42 }
  0xb2   : > { %v2159_v45 = vsel %vm702_vm9, 1.0, %v2641_v42  ;;  %vm1242_vm10 = vcmp.eq.s32.totalorder %v3196_v24, %v2832_v41  ;;  %vm1246_vm11 = vcmp.eq.s32.totalorder %v3199_v25, %v2832_v41  ;;  %v1082_v47 = vsub.f32 %v2027_v10, %v2155_v44 }
  0xb3   : > { %v2391_v46 = vpack.c.bf16 %v1628_v43, %v1624_v9  ;;  %v1086_v48 = vsub.f32 %v2031_v8, %v2159_v45  ;;  %v2283_v49 = vsel %vm1242_vm10, 1.0, %v2641_v42  ;;  %v2287_v50 = vsel %vm1246_vm11, 1.0, %v2641_v42 }
  0xb4   : > { %vm279_vm12 = vcmp.eq.s32.totalorder %v3196_v24, %v2802_v26  ;;  %vm283_vm13 = vcmp.eq.s32.totalorder %v3199_v25, %v2802_v26  ;;  %vm695_vm14 = vcmp.eq.s32.totalorder %v3196_v24, %v2810_v30  ;;  %v1626_v51 = vadd.f32 %v2283_v49, %v1082_v47 }
  0xb5   : > { %2392 = vmatprep.subr.bf16.mxu0 %v2391_v46  ;;  %v1630_v52 = vadd.f32 %v2287_v50, %v1086_v48  ;;  %v2024_v53 = vsel %vm279_vm12, 1.0, %v2641_v42  ;;  %v2028_v54 = vsel %vm283_vm13, 1.0, %v2641_v42  ;;  %vm699_vm15 = vcmp.eq.s32.totalorder %v3199_v25, %v2810_v30 }
  0xb6   : > { %v2152_v55 = vsel %vm695_vm14, 1.0, %v2641_v42  ;;  %vm1239_vm0 = vcmp.eq.s32.totalorder %v3196_v24, %v2826_v38  ;;  %vm1243_vm1 = vcmp.eq.s32.totalorder %v3199_v25, %v2826_v38  ;;  %v2156_v57 = vsel %vm699_vm15, 1.0, %v2641_v42 }
  0xb7   : > { %v2455_v56 = vpack.c.bf16 %v1630_v52, %v1626_v51  ;;  %v1079_v58 = vsub.f32 %v2024_v53, %v2152_v55  ;;  %v2280_v59 = vsel %vm1239_vm0, 1.0, %v2641_v42  ;;  %v1083_v60 = vsub.f32 %v2028_v54, %v2156_v57 }
  0xb8   : > { %v2284_v61 = vsel %vm1243_vm1, 1.0, %v2641_v42  ;;  %vm281_vm2 = vcmp.eq.s32.totalorder %v3196_v24, %v2806_v28  ;;  %vm285_vm3 = vcmp.eq.s32.totalorder %v3199_v25, %v2806_v28  ;;  %vm697_vm4 = vcmp.eq.s32.totalorder %v3196_v24, %v2814_v32 }
  0xb9   : > { %2456 = vmatprep.subr.bf16.mxu1 %v2455_v56  ;;  %v1623_v62 = vadd.f32 %v2280_v59, %v1079_v58  ;;  %v2026_v63 = vsel %vm281_vm2, 1.0, %v2641_v42  ;;  %v2030_v0 = vsel %vm285_vm3, 1.0, %v2641_v42  ;;  %v1627_v2 = vadd.f32 %v2284_v61, %v1083_v60 }
  0xba   : > { %vm701_vm5 = vcmp.eq.s32.totalorder %v3199_v25, %v2814_v32  ;;  %v2154_v3 = vsel %vm697_vm4, 1.0, %v2641_v42  ;;  %vm1241_vm6 = vcmp.eq.s32.totalorder %v3196_v24, %v2830_v40  ;;  %vm1245_vm7 = vcmp.eq.s32.totalorder %v3199_v25, %v2830_v40 }
  0xbb   : > { %v2158_v4 = vsel %vm701_vm5, 1.0, %v2641_v42  ;;  %v1081_v5 = vsub.f32 %v2026_v63, %v2154_v3  ;;  %v2282_v6 = vsel %vm1241_vm6, 1.0, %v2641_v42  ;;  %v2393_v7 = vpack.c.bf16 %v1627_v2, %v1623_v62 }
  0xbc   : > { %v1085_v14 = vsub.f32 %v2030_v0, %v2158_v4  ;;  %v2286_v15 = vsel %vm1245_vm7, 1.0, %v2641_v42  ;;  %v3349_v18 = vadd.s32 120, %v2770_v1  ;;  %vm288_vm8 = vcmp.eq.s32.totalorder %v3202_v34, %v2804_v27 }
  0xbd   : > { %v1625_v19 = vadd.f32 %v2282_v6, %v1081_v5  ;;  %vm704_vm9 = vcmp.eq.s32.totalorder %v3202_v34, %v2812_v31  ;;  %vm1248_vm10 = vcmp.eq.s32.totalorder %v3202_v34, %v2828_v39  ;;  %2394 = vmatpush1.bf16.msra.mxu0 %v2393_v7  ;;  %v2033_v25 = vsel %vm288_vm8, 1.0, %v2641_v42 }
  0xbe   : > { %v1629_v24 = vadd.f32 %v2286_v15, %v1085_v14  ;;  %vm292_vm11 = vcmp.eq.s32.totalorder %v3349_v18, %v2804_v27  ;;  %vm708_vm12 = vcmp.eq.s32.totalorder %v3349_v18, %v2812_v31  ;;  %v2161_v21 = vsel %vm704_vm9, 1.0, %v2641_v42 }
  0xbf   : > { %v2037_v20 = vsel %vm292_vm11, 1.0, %v2641_v42  ;;  %v2165_v22 = vsel %vm708_vm12, 1.0, %v2641_v42  ;;  %vm1252_vm13 = vcmp.eq.s32.totalorder %v3349_v18, %v2828_v39  ;;  %v1088_v17 = vsub.f32 %v2033_v25, %v2161_v21 }
  0xc0   : > { %v2457_v23 = vpack.c.bf16 %v1629_v24, %v1625_v19  ;;  %v1092_v13 = vsub.f32 %v2037_v20, %v2165_v22  ;;  %v2289_v35 = vsel %vm1248_vm10, 1.0, %v2641_v42  ;;  %v2293_v16 = vsel %vm1252_vm13, 1.0, %v2641_v42 }
  0xc1   : > { %vm290_vm14 = vcmp.eq.s32.totalorder %v3202_v34, %v2808_v29  ;;  %vm294_vm15 = vcmp.eq.s32.totalorder %v3349_v18, %v2808_v29  ;;  %vm706_vm0 = vcmp.eq.s32.totalorder %v3202_v34, %v2816_v33  ;;  %v1632_v36 = vadd.f32 %v2289_v35, %v1088_v17 }
  0xc2   : > { %2458 = vmatpush1.bf16.msra.mxu1 %v2457_v23  ;;  %v1636_v11 = vadd.f32 %v2293_v16, %v1092_v13  ;;  %v2035_v37 = vsel %vm290_vm14, 1.0, %v2641_v42  ;;  %v2039_v12 = vsel %vm294_vm15, 1.0, %v2641_v42  ;;  %vm710_vm1 = vcmp.eq.s32.totalorder %v3349_v18, %v2816_v33 }
  0xc3   : > { %v2163_v9 = vsel %vm706_vm0, 1.0, %v2641_v42  ;;  %vm1250_vm2 = vcmp.eq.s32.totalorder %v3202_v34, %v2832_v41  ;;  %vm1254_vm3 = vcmp.eq.s32.totalorder %v3349_v18, %v2832_v41  ;;  %v2167_v10 = vsel %vm710_vm1, 1.0, %v2641_v42 }
  0xc4   : > { %v2395_v43 = vpack.c.bf16 %v1636_v11, %v1632_v36  ;;  %v1090_v8 = vsub.f32 %v2035_v37, %v2163_v9  ;;  %v2291_v44 = vsel %vm1250_vm2, 1.0, %v2641_v42  ;;  %v1094_v45 = vsub.f32 %v2039_v12, %v2167_v10 }
  0xc5   : > { %v2295_v46 = vsel %vm1254_vm3, 1.0, %v2641_v42  ;;  %vm287_vm4 = vcmp.eq.s32.totalorder %v3202_v34, %v2802_v26  ;;  %vm291_vm5 = vcmp.eq.s32.totalorder %v3349_v18, %v2802_v26  ;;  %vm703_vm6 = vcmp.eq.s32.totalorder %v3202_v34, %v2810_v30 }
  0xc6   : > { %2396 = vmatprep.subr.bf16.mxu0 %v2395_v43  ;;  %v1634_v47 = vadd.f32 %v2291_v44, %v1090_v8  ;;  %v2032_v48 = vsel %vm287_vm4, 1.0, %v2641_v42  ;;  %v2036_v49 = vsel %vm291_vm5, 1.0, %v2641_v42  ;;  %v1638_v50 = vadd.f32 %v2295_v46, %v1094_v45 }
  0xc7   : > { %vm707_vm7 = vcmp.eq.s32.totalorder %v3349_v18, %v2810_v30  ;;  %v2160_v51 = vsel %vm703_vm6, 1.0, %v2641_v42  ;;  %vm1247_vm8 = vcmp.eq.s32.totalorder %v3202_v34, %v2826_v38  ;;  %vm1251_vm9 = vcmp.eq.s32.totalorder %v3349_v18, %v2826_v38 }
  0xc8   : > { %v2164_v52 = vsel %vm707_vm7, 1.0, %v2641_v42  ;;  %v1087_v53 = vsub.f32 %v2032_v48, %v2160_v51  ;;  %v2288_v54 = vsel %vm1247_vm8, 1.0, %v2641_v42  ;;  %v2459_v55 = vpack.c.bf16 %v1638_v50, %v1634_v47 }
  0xc9   : > { %v1091_v56 = vsub.f32 %v2036_v49, %v2164_v52  ;;  %v2292_v57 = vsel %vm1251_vm9, 1.0, %v2641_v42  ;;  %vm289_vm10 = vcmp.eq.s32.totalorder %v3202_v34, %v2806_v28  ;;  %vm293_vm11 = vcmp.eq.s32.totalorder %v3349_v18, %v2806_v28 }
  0xca   : > { %v1631_v58 = vadd.f32 %v2288_v54, %v1087_v53  ;;  %v2034_v59 = vsel %vm289_vm10, 1.0, %v2641_v42  ;;  %vm705_vm12 = vcmp.eq.s32.totalorder %v3202_v34, %v2814_v32  ;;  %2460 = vmatprep.subr.bf16.mxu1 %v2459_v55  ;;  %v2038_v61 = vsel %vm293_vm11, 1.0, %v2641_v42 }
  0xcb   : > { %v1635_v60 = vadd.f32 %v2292_v57, %v1091_v56  ;;  %vm709_vm13 = vcmp.eq.s32.totalorder %v3349_v18, %v2814_v32  ;;  %v2162_v62 = vsel %vm705_vm12, 1.0, %v2641_v42  ;;  %vm1249_vm14 = vcmp.eq.s32.totalorder %v3202_v34, %v2830_v40 }
  0xcc   : > { %v2166_v63 = vsel %vm709_vm13, 1.0, %v2641_v42  ;;  %v1089_v0 = vsub.f32 %v2034_v59, %v2162_v62  ;;  %vm1253_vm15 = vcmp.eq.s32.totalorder %v3349_v18, %v2830_v40  ;;  %v2290_v4 = vsel %vm1249_vm14, 1.0, %v2641_v42 }
  0xcd   : > { %v2397_v2 = vpack.c.bf16 %v1635_v60, %v1631_v58  ;;  %v1093_v3 = vsub.f32 %v2038_v61, %v2166_v63  ;;  %v2294_v5 = vsel %vm1253_vm15, 1.0, %v2641_v42  ;;  %v3424_v7 = vadd.s32 128, %v2770_v1 }
  0xce   : > { %v1633_v6 = vadd.f32 %v2290_v4, %v1089_v0  ;;  %v3427_v14 = vadd.s32 136, %v2770_v1  ;;  %v3430_v15 = vadd.s32 144, %v2770_v1  ;;  %v3433_v18 = vadd.s32 152, %v2770_v1 }
  0xcf   : > { %2398 = vmatpush1.bf16.msra.mxu0 %v2397_v2  ;;  %v1637_v34 = vadd.f32 %v2294_v5, %v1093_v3  ;;  %v3436_v19 = vadd.s32 160, %v2770_v1  ;;  %v3439_v24 = vadd.s32 168, %v2770_v1  ;;  %vm296_vm0 = vcmp.eq.s32.totalorder %v3424_v7, %v2804_v27 }
  0xd0   : > { %vm300_vm1 = vcmp.eq.s32.totalorder %v3427_v14, %v2804_v27  ;;  %vm712_vm2 = vcmp.eq.s32.totalorder %v3424_v7, %v2812_v31  ;;  %vm716_vm3 = vcmp.eq.s32.totalorder %v3427_v14, %v2812_v31  ;;  %v2041_v20 = vsel %vm296_vm0, 1.0, %v2641_v42 }
  0xd1   : > { %v2461_v25 = vpack.c.bf16 %v1637_v34, %v1633_v6  ;;  %v2045_v21 = vsel %vm300_vm1, 1.0, %v2641_v42  ;;  %v2169_v22 = vsel %vm712_vm2, 1.0, %v2641_v42  ;;  %v2173_v23 = vsel %vm716_vm3, 1.0, %v2641_v42  ;;  %v165_v6 = vld [vmem:[%s4111_s1 + $0x8] sm:$0xff] }
  0xd2   : > { %v1096_v17 = vsub.f32 %v2041_v20, %v2169_v22  ;;  %vm1256_vm4 = vcmp.eq.s32.totalorder %v3424_v7, %v2828_v39  ;;  %vm1260_vm5 = vcmp.eq.s32.totalorder %v3427_v14, %v2828_v39  ;;  %v1100_v13 = vsub.f32 %v2045_v21, %v2173_v23  ;;  %1767 = vmatprep.mubr.f32.mxu0 %v165_v6 }
  0xd3   : > { %2462 = vmatpush1.bf16.msra.mxu1 %v2461_v25  ;;  %v2297_v35 = vsel %vm1256_vm4, 1.0, %v2641_v42  ;;  %v2301_v16 = vsel %vm1260_vm5, 1.0, %v2641_v42  ;;  %vm298_vm6 = vcmp.eq.s32.totalorder %v3424_v7, %v2808_v29  ;;  %vm302_vm7 = vcmp.eq.s32.totalorder %v3427_v14, %v2808_v29  ;;  %1838 = vmatprep.mubr.f32.mxu1 %v165_v6 }
  0xd4   : > { %v1640_v36 = vadd.f32 %v2297_v35, %v1096_v17  ;;  %v2043_v11 = vsel %vm298_vm6, 1.0, %v2641_v42  ;;  %vm714_vm8 = vcmp.eq.s32.totalorder %v3424_v7, %v2816_v33  ;;  %v1644_v37 = vadd.f32 %v2301_v16, %v1100_v13 }
  0xd5   : > { %v2047_v12 = vsel %vm302_vm7, 1.0, %v2641_v42  ;;  %vm718_vm9 = vcmp.eq.s32.totalorder %v3427_v14, %v2816_v33  ;;  %v2171_v9 = vsel %vm714_vm8, 1.0, %v2641_v42  ;;  %vm1258_vm10 = vcmp.eq.s32.totalorder %v3424_v7, %v2832_v41 }
  0xd6   : > { %v2175_v43 = vsel %vm718_vm9, 1.0, %v2641_v42  ;;  %v1098_v10 = vsub.f32 %v2043_v11, %v2171_v9  ;;  %vm1262_vm11 = vcmp.eq.s32.totalorder %v3427_v14, %v2832_v41  ;;  %v2399_v8 = vpack.c.bf16 %v1644_v37, %v1640_v36 }
  0xd7   : > { %v1102_v44 = vsub.f32 %v2047_v12, %v2175_v43  ;;  %v2299_v45 = vsel %vm1258_vm10, 1.0, %v2641_v42  ;;  %v2303_v46 = vsel %vm1262_vm11, 1.0, %v2641_v42  ;;  %vm295_vm12 = vcmp.eq.s32.totalorder %v3424_v7, %v2802_v26 }
  0xd8   : > { %v1642_v47 = vadd.f32 %v2299_v45, %v1098_v10  ;;  %vm299_vm13 = vcmp.eq.s32.totalorder %v3427_v14, %v2802_v26  ;;  %vm711_vm14 = vcmp.eq.s32.totalorder %v3424_v7, %v2810_v30  ;;  %2400 = vmatprep.subr.bf16.mxu0 %v2399_v8  ;;  %v2040_v49 = vsel %vm295_vm12, 1.0, %v2641_v42 }
  0xd9   : > { %v1646_v48 = vadd.f32 %v2303_v46, %v1102_v44  ;;  %v2044_v50 = vsel %vm299_vm13, 1.0, %v2641_v42  ;;  %vm715_vm15 = vcmp.eq.s32.totalorder %v3427_v14, %v2810_v30  ;;  %v2168_v51 = vsel %vm711_vm14, 1.0, %v2641_v42 }
  0xda   : > { %v2172_v52 = vsel %vm715_vm15, 1.0, %v2641_v42  ;;  %vm1255_vm0 = vcmp.eq.s32.totalorder %v3424_v7, %v2826_v38  ;;  %vm1259_vm1 = vcmp.eq.s32.totalorder %v3427_v14, %v2826_v38  ;;  %v1095_v54 = vsub.f32 %v2040_v49, %v2168_v51 }
  0xdb   : > { %v2463_v53 = vpack.c.bf16 %v1646_v48, %v1642_v47  ;;  %v1099_v55 = vsub.f32 %v2044_v50, %v2172_v52  ;;  %v2296_v56 = vsel %vm1255_vm0, 1.0, %v2641_v42  ;;  %v2300_v57 = vsel %vm1259_vm1, 1.0, %v2641_v42 }
  0xdc   : > { %vm297_vm2 = vcmp.eq.s32.totalorder %v3424_v7, %v2806_v28  ;;  %vm301_vm3 = vcmp.eq.s32.totalorder %v3427_v14, %v2806_v28  ;;  %vm713_vm4 = vcmp.eq.s32.totalorder %v3424_v7, %v2814_v32  ;;  %v1639_v58 = vadd.f32 %v2296_v56, %v1095_v54 }
  0xdd   : > { %2464 = vmatprep.subr.bf16.mxu1 %v2463_v53  ;;  %v1643_v59 = vadd.f32 %v2300_v57, %v1099_v55  ;;  %v2042_v60 = vsel %vm297_vm2, 1.0, %v2641_v42  ;;  %v2046_v61 = vsel %vm301_vm3, 1.0, %v2641_v42  ;;  %vm717_vm5 = vcmp.eq.s32.totalorder %v3427_v14, %v2814_v32 }
  0xde   : > { %v2170_v62 = vsel %vm713_vm4, 1.0, %v2641_v42  ;;  %vm1257_vm6 = vcmp.eq.s32.totalorder %v3424_v7, %v2830_v40  ;;  %vm1261_vm7 = vcmp.eq.s32.totalorder %v3427_v14, %v2830_v40  ;;  %v2174_v0 = vsel %vm717_vm5, 1.0, %v2641_v42 }
  0xdf   : > { %v2401_v63 = vpack.c.bf16 %v1643_v59, %v1639_v58  ;;  %v1097_v2 = vsub.f32 %v2042_v60, %v2170_v62  ;;  %v2298_v3 = vsel %vm1257_vm6, 1.0, %v2641_v42  ;;  %v1101_v4 = vsub.f32 %v2046_v61, %v2174_v0 }
  0xe0   : > { %v2302_v5 = vsel %vm1261_vm7, 1.0, %v2641_v42  ;;  %vm304_vm8 = vcmp.eq.s32.totalorder %v3430_v15, %v2804_v27  ;;  %vm308_vm9 = vcmp.eq.s32.totalorder %v3433_v18, %v2804_v27  ;;  %vm720_vm10 = vcmp.eq.s32.totalorder %v3430_v15, %v2812_v31 }
  0xe1   : > { %2402 = vmatpush1.bf16.msra.mxu0 %v2401_v63  ;;  %v1641_v7 = vadd.f32 %v2298_v3, %v1097_v2  ;;  %v2049_v14 = vsel %vm304_vm8, 1.0, %v2641_v42  ;;  %v2053_v34 = vsel %vm308_vm9, 1.0, %v2641_v42  ;;  %v1645_v25 = vadd.f32 %v2302_v5, %v1101_v4 }
  0xe2   : > { %vm724_vm11 = vcmp.eq.s32.totalorder %v3433_v18, %v2812_v31  ;;  %v2177_v20 = vsel %vm720_vm10, 1.0, %v2641_v42  ;;  %vm1264_vm12 = vcmp.eq.s32.totalorder %v3430_v15, %v2828_v39  ;;  %vm1268_vm13 = vcmp.eq.s32.totalorder %v3433_v18, %v2828_v39 }
  0xe3   : > { %v2181_v21 = vsel %vm724_vm11, 1.0, %v2641_v42  ;;  %v1104_v22 = vsub.f32 %v2049_v14, %v2177_v20  ;;  %v2305_v23 = vsel %vm1264_vm12, 1.0, %v2641_v42  ;;  %v2465_v17 = vpack.c.bf16 %v1645_v25, %v1641_v7 }
  0xe4   : > { %v1108_v13 = vsub.f32 %v2053_v34, %v2181_v21  ;;  %v2309_v35 = vsel %vm1268_vm13, 1.0, %v2641_v42  ;;  %vm306_vm14 = vcmp.eq.s32.totalorder %v3430_v15, %v2808_v29  ;;  %vm310_vm15 = vcmp.eq.s32.totalorder %v3433_v18, %v2808_v29 }
  0xe5   : > { %v1648_v16 = vadd.f32 %v2305_v23, %v1104_v22  ;;  %v2051_v36 = vsel %vm306_vm14, 1.0, %v2641_v42  ;;  %vm722_vm0 = vcmp.eq.s32.totalorder %v3430_v15, %v2816_v33  ;;  %2466 = vmatpush1.bf16.msra.mxu1 %v2465_v17  ;;  %v2055_v37 = vsel %vm310_vm15, 1.0, %v2641_v42 }
  0xe6   : > { %v1652_v11 = vadd.f32 %v2309_v35, %v1108_v13  ;;  %vm726_vm1 = vcmp.eq.s32.totalorder %v3433_v18, %v2816_v33  ;;  %v2179_v12 = vsel %vm722_vm0, 1.0, %v2641_v42  ;;  %vm1266_vm2 = vcmp.eq.s32.totalorder %v3430_v15, %v2832_v41 }
  0xe7   : > { %v2183_v9 = vsel %vm726_vm1, 1.0, %v2641_v42  ;;  %v1106_v43 = vsub.f32 %v2051_v36, %v2179_v12  ;;  %vm1270_vm3 = vcmp.eq.s32.totalorder %v3433_v18, %v2832_v41  ;;  %v2307_v44 = vsel %vm1266_vm2, 1.0, %v2641_v42 }
  0xe8   : > { %v2403_v10 = vpack.c.bf16 %v1652_v11, %v1648_v16  ;;  %v1110_v8 = vsub.f32 %v2055_v37, %v2183_v9  ;;  %v2311_v45 = vsel %vm1270_vm3, 1.0, %v2641_v42  ;;  %vm303_vm4 = vcmp.eq.s32.totalorder %v3430_v15, %v2802_v26 }
  0xe9   : > { %v1650_v46 = vadd.f32 %v2307_v44, %v1106_v43  ;;  %vm307_vm5 = vcmp.eq.s32.totalorder %v3433_v18, %v2802_v26  ;;  %vm719_vm6 = vcmp.eq.s32.totalorder %v3430_v15, %v2810_v30  ;;  %v2048_v48 = vsel %vm303_vm4, 1.0, %v2641_v42 }
  0xea   : > { %2404 = vmatprep.subr.bf16.mxu0 %v2403_v10  ;;  %v1654_v47 = vadd.f32 %v2311_v45, %v1110_v8  ;;  %v2052_v49 = vsel %vm307_vm5, 1.0, %v2641_v42  ;;  %vm723_vm7 = vcmp.eq.s32.totalorder %v3433_v18, %v2810_v30  ;;  %v2176_v50 = vsel %vm719_vm6, 1.0, %v2641_v42 }
  0xeb   : > { %v2180_v51 = vsel %vm723_vm7, 1.0, %v2641_v42  ;;  %vm1263_vm8 = vcmp.eq.s32.totalorder %v3430_v15, %v2826_v38  ;;  %vm1267_vm9 = vcmp.eq.s32.totalorder %v3433_v18, %v2826_v38  ;;  %v1103_v53 = vsub.f32 %v2048_v48, %v2176_v50 }
  0xec   : > { %v2467_v52 = vpack.c.bf16 %v1654_v47, %v1650_v46  ;;  %v1107_v54 = vsub.f32 %v2052_v49, %v2180_v51  ;;  %v2304_v55 = vsel %vm1263_vm8, 1.0, %v2641_v42  ;;  %v2308_v56 = vsel %vm1267_vm9, 1.0, %v2641_v42 }
  0xed   : > { %vm305_vm10 = vcmp.eq.s32.totalorder %v3430_v15, %v2806_v28  ;;  %vm309_vm11 = vcmp.eq.s32.totalorder %v3433_v18, %v2806_v28  ;;  %vm721_vm12 = vcmp.eq.s32.totalorder %v3430_v15, %v2814_v32  ;;  %v1647_v57 = vadd.f32 %v2304_v55, %v1103_v53 }
  0xee   : > { %2468 = vmatprep.subr.bf16.mxu1 %v2467_v52  ;;  %v1651_v58 = vadd.f32 %v2308_v56, %v1107_v54  ;;  %v2050_v59 = vsel %vm305_vm10, 1.0, %v2641_v42  ;;  %v2054_v60 = vsel %vm309_vm11, 1.0, %v2641_v42  ;;  %vm725_vm13 = vcmp.eq.s32.totalorder %v3433_v18, %v2814_v32 }
  0xef   : > { %v2178_v61 = vsel %vm721_vm12, 1.0, %v2641_v42  ;;  %vm1265_vm14 = vcmp.eq.s32.totalorder %v3430_v15, %v2830_v40  ;;  %vm1269_vm15 = vcmp.eq.s32.totalorder %v3433_v18, %v2830_v40  ;;  %v2182_v63 = vsel %vm725_vm13, 1.0, %v2641_v42 }
  0xf0   : > { %v2405_v62 = vpack.c.bf16 %v1651_v58, %v1647_v57  ;;  %v1105_v0 = vsub.f32 %v2050_v59, %v2178_v61  ;;  %v2306_v2 = vsel %vm1265_vm14, 1.0, %v2641_v42  ;;  %v1109_v3 = vsub.f32 %v2054_v60, %v2182_v63 }
  0xf1   : > { %v2310_v4 = vsel %vm1269_vm15, 1.0, %v2641_v42  ;;  %vm312_vm0 = vcmp.eq.s32.totalorder %v3436_v19, %v2804_v27  ;;  %vm316_vm1 = vcmp.eq.s32.totalorder %v3439_v24, %v2804_v27  ;;  %vm728_vm2 = vcmp.eq.s32.totalorder %v3436_v19, %v2812_v31 }
  0xf2   : > { %2406 = vmatpush1.bf16.msra.mxu0 %v2405_v62  ;;  %v1649_v15 = vadd.f32 %v2306_v2, %v1105_v0  ;;  %v2057_v5 = vsel %vm312_vm0, 1.0, %v2641_v42  ;;  %v2061_v18 = vsel %vm316_vm1, 1.0, %v2641_v42  ;;  %v1653_v6 = vadd.f32 %v2310_v4, %v1109_v3 }
  0xf3   : > { %vm732_vm3 = vcmp.eq.s32.totalorder %v3439_v24, %v2812_v31  ;;  %v2185_v7 = vsel %vm728_vm2, 1.0, %v2641_v42  ;;  %vm1272_vm4 = vcmp.eq.s32.totalorder %v3436_v19, %v2828_v39  ;;  %vm1276_vm5 = vcmp.eq.s32.totalorder %v3439_v24, %v2828_v39 }
  0xf4   : > { %v2189_v14 = vsel %vm732_vm3, 1.0, %v2641_v42  ;;  %v1112_v34 = vsub.f32 %v2057_v5, %v2185_v7  ;;  %v2313_v25 = vsel %vm1272_vm4, 1.0, %v2641_v42  ;;  %v2469_v20 = vpack.c.bf16 %v1653_v6, %v1649_v15 }
  0xf5   : > { %v1116_v21 = vsub.f32 %v2061_v18, %v2189_v14  ;;  %v2317_v22 = vsel %vm1276_vm5, 1.0, %v2641_v42  ;;  %vm314_vm6 = vcmp.eq.s32.totalorder %v3436_v19, %v2808_v29  ;;  %vm318_vm7 = vcmp.eq.s32.totalorder %v3439_v24, %v2808_v29 }
  0xf6   : > { %v1656_v23 = vadd.f32 %v2313_v25, %v1112_v34  ;;  %v2059_v17 = vsel %vm314_vm6, 1.0, %v2641_v42  ;;  %vm730_vm8 = vcmp.eq.s32.totalorder %v3436_v19, %v2816_v33  ;;  %2470 = vmatpush1.bf16.msra.mxu1 %v2469_v20  ;;  %v2063_v35 = vsel %vm318_vm7, 1.0, %v2641_v42 }
  0xf7   : > { %v1660_v13 = vadd.f32 %v2317_v22, %v1116_v21  ;;  %vm734_vm9 = vcmp.eq.s32.totalorder %v3439_v24, %v2816_v33  ;;  %v2187_v16 = vsel %vm730_vm8, 1.0, %v2641_v42  ;;  %vm1274_vm10 = vcmp.eq.s32.totalorder %v3436_v19, %v2832_v41 }
  0xf8   : > { %v2191_v36 = vsel %vm734_vm9, 1.0, %v2641_v42  ;;  %v1114_v11 = vsub.f32 %v2059_v17, %v2187_v16  ;;  %vm1278_vm11 = vcmp.eq.s32.totalorder %v3439_v24, %v2832_v41  ;;  %v2315_v9 = vsel %vm1274_vm10, 1.0, %v2641_v42 }
  0xf9   : > { %v2407_v37 = vpack.c.bf16 %v1660_v13, %v1656_v23  ;;  %v1118_v12 = vsub.f32 %v2063_v35, %v2191_v36  ;;  %v2319_v43 = vsel %vm1278_vm11, 1.0, %v2641_v42  ;;  %vm311_vm12 = vcmp.eq.s32.totalorder %v3436_v19, %v2802_v26 }
  0xfa   : > { %v1658_v10 = vadd.f32 %v2315_v9, %v1114_v11  ;;  %vm315_vm13 = vcmp.eq.s32.totalorder %v3439_v24, %v2802_v26  ;;  %vm727_vm14 = vcmp.eq.s32.totalorder %v3436_v19, %v2810_v30  ;;  %v2056_v44 = vsel %vm311_vm12, 1.0, %v2641_v42 }
  0xfb   : > { %2408 = vmatprep.subr.bf16.mxu0 %v2407_v37  ;;  %v1662_v8 = vadd.f32 %v2319_v43, %v1118_v12  ;;  %v2060_v45 = vsel %vm315_vm13, 1.0, %v2641_v42  ;;  %vm731_vm15 = vcmp.eq.s32.totalorder %v3439_v24, %v2810_v30  ;;  %v2184_v46 = vsel %vm727_vm14, 1.0, %v2641_v42 }
  0xfc   : > { %v2188_v47 = vsel %vm731_vm15, 1.0, %v2641_v42  ;;  %vm1271_vm0 = vcmp.eq.s32.totalorder %v3436_v19, %v2826_v38  ;;  %vm1275_vm1 = vcmp.eq.s32.totalorder %v3439_v24, %v2826_v38  ;;  %v1111_v49 = vsub.f32 %v2056_v44, %v2184_v46 }
  0xfd   : > { %v2471_v48 = vpack.c.bf16 %v1662_v8, %v1658_v10  ;;  %v1115_v50 = vsub.f32 %v2060_v45, %v2188_v47  ;;  %v2312_v51 = vsel %vm1271_vm0, 1.0, %v2641_v42  ;;  %v2316_v52 = vsel %vm1275_vm1, 1.0, %v2641_v42 }
  0xfe   : > { %vm313_vm2 = vcmp.eq.s32.totalorder %v3436_v19, %v2806_v28  ;;  %vm317_vm3 = vcmp.eq.s32.totalorder %v3439_v24, %v2806_v28  ;;  %vm729_vm4 = vcmp.eq.s32.totalorder %v3436_v19, %v2814_v32  ;;  %v1655_v53 = vadd.f32 %v2312_v51, %v1111_v49 }
  0xff   : > { %2472 = vmatprep.subr.bf16.mxu1 %v2471_v48  ;;  %v1659_v54 = vadd.f32 %v2316_v52, %v1115_v50  ;;  %v2058_v55 = vsel %vm313_vm2, 1.0, %v2641_v42  ;;  %v2062_v56 = vsel %vm317_vm3, 1.0, %v2641_v42  ;;  %vm733_vm5 = vcmp.eq.s32.totalorder %v3439_v24, %v2814_v32 }
 0x100   : > { %v2186_v57 = vsel %vm729_vm4, 1.0, %v2641_v42  ;;  %vm1273_vm6 = vcmp.eq.s32.totalorder %v3436_v19, %v2830_v40  ;;  %vm1277_vm7 = vcmp.eq.s32.totalorder %v3439_v24, %v2830_v40  ;;  %v2190_v59 = vsel %vm733_vm5, 1.0, %v2641_v42 }
 0x101   : > { %v2409_v58 = vpack.c.bf16 %v1659_v54, %v1655_v53  ;;  %v1113_v60 = vsub.f32 %v2058_v55, %v2186_v57  ;;  %v2314_v61 = vsel %vm1273_vm6, 1.0, %v2641_v42  ;;  %v1117_v62 = vsub.f32 %v2062_v56, %v2190_v59 }
 0x102   : > { %v2318_v63 = vsel %vm1277_vm7, 1.0, %v2641_v42  ;;  %v3661_v0 = vadd.s32 176, %v2770_v1  ;;  %v3664_v2 = vadd.s32 184, %v2770_v1  ;;  %v3667_v3 = vadd.s32 192, %v2770_v1 }
 0x103   : > { %2410 = vmatpush1.bf16.msra.mxu0 %v2409_v58  ;;  %v1657_v19 = vadd.f32 %v2314_v61, %v1113_v60  ;;  %v3670_v24 = vadd.s32 200, %v2770_v1  ;;  %v3673_v4 = vadd.s32 208, %v2770_v1  ;;  %v1661_v15 = vadd.f32 %v2318_v63, %v1117_v62 }
 0x104   : > { %vm320_vm8 = vcmp.eq.s32.totalorder %v3661_v0, %v2804_v27  ;;  %vm324_vm9 = vcmp.eq.s32.totalorder %v3664_v2, %v2804_v27  ;;  %vm736_vm10 = vcmp.eq.s32.totalorder %v3661_v0, %v2812_v31  ;;  %vm740_vm11 = vcmp.eq.s32.totalorder %v3664_v2, %v2812_v31 }
 0x105   : > { %v2065_v5 = vsel %vm320_vm8, 1.0, %v2641_v42  ;;  %v2069_v18 = vsel %vm324_vm9, 1.0, %v2641_v42  ;;  %v2193_v6 = vsel %vm736_vm10, 1.0, %v2641_v42  ;;  %v2473_v7 = vpack.c.bf16 %v1661_v15, %v1657_v19 }
 0x106   : > { %v2197_v14 = vsel %vm740_vm11, 1.0, %v2641_v42  ;;  %v1120_v34 = vsub.f32 %v2065_v5, %v2193_v6  ;;  %vm1280_vm12 = vcmp.eq.s32.totalorder %v3661_v0, %v2828_v39  ;;  %vm1284_vm13 = vcmp.eq.s32.totalorder %v3664_v2, %v2828_v39 }
 0x107   : > { %v1124_v25 = vsub.f32 %v2069_v18, %v2197_v14  ;;  %v2321_v20 = vsel %vm1280_vm12, 1.0, %v2641_v42  ;;  %vm322_vm14 = vcmp.eq.s32.totalorder %v3661_v0, %v2808_v29  ;;  %2474 = vmatpush1.bf16.msra.mxu1 %v2473_v7  ;;  %v2325_v21 = vsel %vm1284_vm13, 1.0, %v2641_v42 }
 0x108   : > { %v1664_v22 = vadd.f32 %v2321_v20, %v1120_v34  ;;  %vm326_vm15 = vcmp.eq.s32.totalorder %v3664_v2, %v2808_v29  ;;  %v2067_v23 = vsel %vm322_vm14, 1.0, %v2641_v42  ;;  %vm738_vm0 = vcmp.eq.s32.totalorder %v3661_v0, %v2816_v33 }
 0x109   : > { %v1668_v17 = vadd.f32 %v2325_v21, %v1124_v25  ;;  %v2071_v13 = vsel %vm326_vm15, 1.0, %v2641_v42  ;;  %vm742_vm1 = vcmp.eq.s32.totalorder %v3664_v2, %v2816_v33  ;;  %v2195_v35 = vsel %vm738_vm0, 1.0, %v2641_v42 }
 0x10a   : > { %v2199_v16 = vsel %vm742_vm1, 1.0, %v2641_v42  ;;  %vm1282_vm2 = vcmp.eq.s32.totalorder %v3661_v0, %v2832_v41  ;;  %vm1286_vm3 = vcmp.eq.s32.totalorder %v3664_v2, %v2832_v41  ;;  %v1122_v11 = vsub.f32 %v2067_v23, %v2195_v35 }
 0x10b   : > { %v2411_v36 = vpack.c.bf16 %v1668_v17, %v1664_v22  ;;  %v1126_v37 = vsub.f32 %v2071_v13, %v2199_v16  ;;  %v2323_v12 = vsel %vm1282_vm2, 1.0, %v2641_v42  ;;  %v2327_v9 = vsel %vm1286_vm3, 1.0, %v2641_v42 }
 0x10c   : > { %vm319_vm4 = vcmp.eq.s32.totalorder %v3661_v0, %v2802_v26  ;;  %vm323_vm5 = vcmp.eq.s32.totalorder %v3664_v2, %v2802_v26  ;;  %vm735_vm6 = vcmp.eq.s32.totalorder %v3661_v0, %v2810_v30  ;;  %v1666_v43 = vadd.f32 %v2323_v12, %v1122_v11 }
 0x10d   : > { %2412 = vmatprep.subr.bf16.mxu0 %v2411_v36  ;;  %v1670_v10 = vadd.f32 %v2327_v9, %v1126_v37  ;;  %v2064_v8 = vsel %vm319_vm4, 1.0, %v2641_v42  ;;  %v2068_v44 = vsel %vm323_vm5, 1.0, %v2641_v42  ;;  %vm739_vm7 = vcmp.eq.s32.totalorder %v3664_v2, %v2810_v30 }
 0x10e   : > { %v2192_v45 = vsel %vm735_vm6, 1.0, %v2641_v42  ;;  %vm1279_vm8 = vcmp.eq.s32.totalorder %v3661_v0, %v2826_v38  ;;  %vm1283_vm9 = vcmp.eq.s32.totalorder %v3664_v2, %v2826_v38  ;;  %v2196_v47 = vsel %vm739_vm7, 1.0, %v2641_v42 }
 0x10f   : > { %v2475_v46 = vpack.c.bf16 %v1670_v10, %v1666_v43  ;;  %v1119_v48 = vsub.f32 %v2064_v8, %v2192_v45  ;;  %v2320_v49 = vsel %vm1279_vm8, 1.0, %v2641_v42  ;;  %v1123_v50 = vsub.f32 %v2068_v44, %v2196_v47 }
 0x110   : > { %v2324_v51 = vsel %vm1283_vm9, 1.0, %v2641_v42  ;;  %vm321_vm10 = vcmp.eq.s32.totalorder %v3661_v0, %v2806_v28  ;;  %vm325_vm11 = vcmp.eq.s32.totalorder %v3664_v2, %v2806_v28  ;;  %vm737_vm12 = vcmp.eq.s32.totalorder %v3661_v0, %v2814_v32 }
 0x111   : > { %2476 = vmatprep.subr.bf16.mxu1 %v2475_v46  ;;  %v1663_v52 = vadd.f32 %v2320_v49, %v1119_v48  ;;  %v2066_v53 = vsel %vm321_vm10, 1.0, %v2641_v42  ;;  %v2070_v54 = vsel %vm325_vm11, 1.0, %v2641_v42  ;;  %v1667_v55 = vadd.f32 %v2324_v51, %v1123_v50 }
 0x112   : > { %vm741_vm13 = vcmp.eq.s32.totalorder %v3664_v2, %v2814_v32  ;;  %v2194_v56 = vsel %vm737_vm12, 1.0, %v2641_v42  ;;  %vm1281_vm14 = vcmp.eq.s32.totalorder %v3661_v0, %v2830_v40  ;;  %vm1285_vm15 = vcmp.eq.s32.totalorder %v3664_v2, %v2830_v40 }
 0x113   : > { %v2198_v57 = vsel %vm741_vm13, 1.0, %v2641_v42  ;;  %v1121_v58 = vsub.f32 %v2066_v53, %v2194_v56  ;;  %v2322_v59 = vsel %vm1281_vm14, 1.0, %v2641_v42  ;;  %v2413_v60 = vpack.c.bf16 %v1667_v55, %v1663_v52 }
 0x114   : > { %v1125_v61 = vsub.f32 %v2070_v54, %v2198_v57  ;;  %v2326_v62 = vsel %vm1285_vm15, 1.0, %v2641_v42  ;;  %vm328_vm0 = vcmp.eq.s32.totalorder %v3667_v3, %v2804_v27  ;;  %vm332_vm1 = vcmp.eq.s32.totalorder %v3670_v24, %v2804_v27 }
 0x115   : > { %v1665_v63 = vadd.f32 %v2322_v59, %v1121_v58  ;;  %v2073_v0 = vsel %vm328_vm0, 1.0, %v2641_v42  ;;  %vm744_vm2 = vcmp.eq.s32.totalorder %v3667_v3, %v2812_v31  ;;  %2414 = vmatpush1.bf16.msra.mxu0 %v2413_v60  ;;  %v2077_v19 = vsel %vm332_vm1, 1.0, %v2641_v42 }
 0x116   : > { %v1669_v2 = vadd.f32 %v2326_v62, %v1125_v61  ;;  %vm748_vm3 = vcmp.eq.s32.totalorder %v3670_v24, %v2812_v31  ;;  %v2201_v15 = vsel %vm744_vm2, 1.0, %v2641_v42  ;;  %vm1288_vm4 = vcmp.eq.s32.totalorder %v3667_v3, %v2828_v39 }
 0x117   : > { %v2205_v5 = vsel %vm748_vm3, 1.0, %v2641_v42  ;;  %v1128_v18 = vsub.f32 %v2073_v0, %v2201_v15  ;;  %vm1292_vm5 = vcmp.eq.s32.totalorder %v3670_v24, %v2828_v39  ;;  %v2329_v14 = vsel %vm1288_vm4, 1.0, %v2641_v42 }
 0x118   : > { %v2477_v6 = vpack.c.bf16 %v1669_v2, %v1665_v63  ;;  %v1132_v7 = vsub.f32 %v2077_v19, %v2205_v5  ;;  %v2333_v34 = vsel %vm1292_vm5, 1.0, %v2641_v42  ;;  %vm330_vm6 = vcmp.eq.s32.totalorder %v3667_v3, %v2808_v29 }
 0x119   : > { %v1672_v25 = vadd.f32 %v2329_v14, %v1128_v18  ;;  %vm334_vm7 = vcmp.eq.s32.totalorder %v3670_v24, %v2808_v29  ;;  %vm746_vm8 = vcmp.eq.s32.totalorder %v3667_v3, %v2816_v33  ;;  %v2075_v21 = vsel %vm330_vm6, 1.0, %v2641_v42 }
 0x11a   : > { %2478 = vmatpush1.bf16.msra.mxu1 %v2477_v6  ;;  %v1676_v20 = vadd.f32 %v2333_v34, %v1132_v7  ;;  %v2079_v22 = vsel %vm334_vm7, 1.0, %v2641_v42  ;;  %vm750_vm9 = vcmp.eq.s32.totalorder %v3670_v24, %v2816_v33  ;;  %v2203_v23 = vsel %vm746_vm8, 1.0, %v2641_v42 }
 0x11b   : > { %v2207_v17 = vsel %vm750_vm9, 1.0, %v2641_v42  ;;  %vm1290_vm10 = vcmp.eq.s32.totalorder %v3667_v3, %v2832_v41  ;;  %vm1294_vm11 = vcmp.eq.s32.totalorder %v3670_v24, %v2832_v41  ;;  %v1130_v35 = vsub.f32 %v2075_v21, %v2203_v23 }
 0x11c   : > { %v2415_v13 = vpack.c.bf16 %v1676_v20, %v1672_v25  ;;  %v1134_v16 = vsub.f32 %v2079_v22, %v2207_v17  ;;  %v2331_v36 = vsel %vm1290_vm10, 1.0, %v2641_v42  ;;  %v2335_v11 = vsel %vm1294_vm11, 1.0, %v2641_v42 }
 0x11d   : > { %vm327_vm12 = vcmp.eq.s32.totalorder %v3667_v3, %v2802_v26  ;;  %vm331_vm13 = vcmp.eq.s32.totalorder %v3670_v24, %v2802_v26  ;;  %vm743_vm14 = vcmp.eq.s32.totalorder %v3667_v3, %v2810_v30  ;;  %v1674_v37 = vadd.f32 %v2331_v36, %v1130_v35 }
 0x11e   : > { %2416 = vmatprep.subr.bf16.mxu0 %v2415_v13  ;;  %v1678_v12 = vadd.f32 %v2335_v11, %v1134_v16  ;;  %v2072_v9 = vsel %vm327_vm12, 1.0, %v2641_v42  ;;  %v2076_v43 = vsel %vm331_vm13, 1.0, %v2641_v42  ;;  %vm747_vm15 = vcmp.eq.s32.totalorder %v3670_v24, %v2810_v30 }
 0x11f   : > { %v2200_v10 = vsel %vm743_vm14, 1.0, %v2641_v42  ;;  %vm1287_vm0 = vcmp.eq.s32.totalorder %v3667_v3, %v2826_v38  ;;  %vm1291_vm1 = vcmp.eq.s32.totalorder %v3670_v24, %v2826_v38  ;;  %v2204_v44 = vsel %vm747_vm15, 1.0, %v2641_v42 }
 0x120   : > { %v2479_v8 = vpack.c.bf16 %v1678_v12, %v1674_v37  ;;  %v1127_v45 = vsub.f32 %v2072_v9, %v2200_v10  ;;  %v2328_v46 = vsel %vm1287_vm0, 1.0, %v2641_v42  ;;  %v1131_v47 = vsub.f32 %v2076_v43, %v2204_v44 }
 0x121   : > { %v2332_v48 = vsel %vm1291_vm1, 1.0, %v2641_v42  ;;  %vm329_vm2 = vcmp.eq.s32.totalorder %v3667_v3, %v2806_v28  ;;  %vm333_vm3 = vcmp.eq.s32.totalorder %v3670_v24, %v2806_v28  ;;  %vm745_vm4 = vcmp.eq.s32.totalorder %v3667_v3, %v2814_v32 }
 0x122   : > { %2480 = vmatprep.subr.bf16.mxu1 %v2479_v8  ;;  %v1671_v49 = vadd.f32 %v2328_v46, %v1127_v45  ;;  %v2074_v50 = vsel %vm329_vm2, 1.0, %v2641_v42  ;;  %v2078_v51 = vsel %vm333_vm3, 1.0, %v2641_v42  ;;  %v1675_v52 = vadd.f32 %v2332_v48, %v1131_v47 }
 0x123   : > { %vm749_vm5 = vcmp.eq.s32.totalorder %v3670_v24, %v2814_v32  ;;  %v2202_v53 = vsel %vm745_vm4, 1.0, %v2641_v42  ;;  %vm1289_vm6 = vcmp.eq.s32.totalorder %v3667_v3, %v2830_v40  ;;  %vm1293_vm7 = vcmp.eq.s32.totalorder %v3670_v24, %v2830_v40 }
 0x124   : > { %v2206_v54 = vsel %vm749_vm5, 1.0, %v2641_v42  ;;  %v1129_v55 = vsub.f32 %v2074_v50, %v2202_v53  ;;  %v2330_v56 = vsel %vm1289_vm6, 1.0, %v2641_v42  ;;  %v2417_v57 = vpack.c.bf16 %v1675_v52, %v1671_v49 }
 0x125   : > { %v1133_v58 = vsub.f32 %v2078_v51, %v2206_v54  ;;  %v2334_v59 = vsel %vm1293_vm7, 1.0, %v2641_v42  ;;  %v3820_v60 = vadd.s32 216, %v2770_v1  ;;  %vm336_vm8 = vcmp.eq.s32.totalorder %v3673_v4, %v2804_v27 }
 0x126   : > { %v1673_v61 = vadd.f32 %v2330_v56, %v1129_v55  ;;  %vm752_vm9 = vcmp.eq.s32.totalorder %v3673_v4, %v2812_v31  ;;  %vm1296_vm10 = vcmp.eq.s32.totalorder %v3673_v4, %v2828_v39  ;;  %2418 = vmatpush1.bf16.msra.mxu0 %v2417_v57  ;;  %v2081_v24 = vsel %vm336_vm8, 1.0, %v2641_v42 }
 0x127   : > { %v1677_v3 = vadd.f32 %v2334_v59, %v1133_v58  ;;  %vm340_vm11 = vcmp.eq.s32.totalorder %v3820_v60, %v2804_v27  ;;  %vm756_vm12 = vcmp.eq.s32.totalorder %v3820_v60, %v2812_v31  ;;  %v2209_v63 = vsel %vm752_vm9, 1.0, %v2641_v42 }
 0x128   : > { %v2085_v62 = vsel %vm340_vm11, 1.0, %v2641_v42  ;;  %v2213_v0 = vsel %vm756_vm12, 1.0, %v2641_v42  ;;  %vm1300_vm13 = vcmp.eq.s32.totalorder %v3820_v60, %v2828_v39  ;;  %v1136_v19 = vsub.f32 %v2081_v24, %v2209_v63 }
 0x129   : > { %v2481_v2 = vpack.c.bf16 %v1677_v3, %v1673_v61  ;;  %v1140_v15 = vsub.f32 %v2085_v62, %v2213_v0  ;;  %v2337_v5 = vsel %vm1296_vm10, 1.0, %v2641_v42  ;;  %v2341_v18 = vsel %vm1300_vm13, 1.0, %v2641_v42 }
 0x12a   : > { %vm338_vm14 = vcmp.eq.s32.totalorder %v3673_v4, %v2808_v29  ;;  %vm342_vm15 = vcmp.eq.s32.totalorder %v3820_v60, %v2808_v29  ;;  %vm754_vm0 = vcmp.eq.s32.totalorder %v3673_v4, %v2816_v33  ;;  %v1680_v6 = vadd.f32 %v2337_v5, %v1136_v19 }
 0x12b   : > { %2482 = vmatpush1.bf16.msra.mxu1 %v2481_v2  ;;  %v1684_v7 = vadd.f32 %v2341_v18, %v1140_v15  ;;  %v2083_v14 = vsel %vm338_vm14, 1.0, %v2641_v42  ;;  %v2087_v34 = vsel %vm342_vm15, 1.0, %v2641_v42  ;;  %vm758_vm1 = vcmp.eq.s32.totalorder %v3820_v60, %v2816_v33 }
 0x12c   : > { %v2211_v25 = vsel %vm754_vm0, 1.0, %v2641_v42  ;;  %vm1298_vm2 = vcmp.eq.s32.totalorder %v3673_v4, %v2832_v41  ;;  %vm1302_vm3 = vcmp.eq.s32.totalorder %v3820_v60, %v2832_v41  ;;  %v2215_v21 = vsel %vm758_vm1, 1.0, %v2641_v42 }
 0x12d   : > { %v2419_v20 = vpack.c.bf16 %v1684_v7, %v1680_v6  ;;  %v1138_v22 = vsub.f32 %v2083_v14, %v2211_v25  ;;  %v2339_v23 = vsel %vm1298_vm2, 1.0, %v2641_v42  ;;  %v1142_v17 = vsub.f32 %v2087_v34, %v2215_v21 }
 0x12e   : > { %v2343_v13 = vsel %vm1302_vm3, 1.0, %v2641_v42  ;;  %vm335_vm4 = vcmp.eq.s32.totalorder %v3673_v4, %v2802_v26  ;;  %vm339_vm5 = vcmp.eq.s32.totalorder %v3820_v60, %v2802_v26  ;;  %vm751_vm6 = vcmp.eq.s32.totalorder %v3673_v4, %v2810_v30 }
 0x12f   : > { %2420 = vmatprep.subr.bf16.mxu0 %v2419_v20  ;;  %v1682_v35 = vadd.f32 %v2339_v23, %v1138_v22  ;;  %v2080_v16 = vsel %vm335_vm4, 1.0, %v2641_v42  ;;  %v2084_v36 = vsel %vm339_vm5, 1.0, %v2641_v42  ;;  %v1686_v11 = vadd.f32 %v2343_v13, %v1142_v17 }
 0x130   : > { %vm755_vm7 = vcmp.eq.s32.totalorder %v3820_v60, %v2810_v30  ;;  %v2208_v37 = vsel %vm751_vm6, 1.0, %v2641_v42  ;;  %vm1295_vm8 = vcmp.eq.s32.totalorder %v3673_v4, %v2826_v38  ;;  %vm1299_vm9 = vcmp.eq.s32.totalorder %v3820_v60, %v2826_v38 }
 0x131   : > { %v2212_v12 = vsel %vm755_vm7, 1.0, %v2641_v42  ;;  %v1135_v9 = vsub.f32 %v2080_v16, %v2208_v37  ;;  %v2336_v43 = vsel %vm1295_vm8, 1.0, %v2641_v42  ;;  %v2483_v10 = vpack.c.bf16 %v1686_v11, %v1682_v35 }
 0x132   : > { %v1139_v8 = vsub.f32 %v2084_v36, %v2212_v12  ;;  %v2340_v44 = vsel %vm1299_vm9, 1.0, %v2641_v42  ;;  %vm337_vm10 = vcmp.eq.s32.totalorder %v3673_v4, %v2806_v28  ;;  %vm341_vm11 = vcmp.eq.s32.totalorder %v3820_v60, %v2806_v28 }
 0x133   : > { %v1679_v45 = vadd.f32 %v2336_v43, %v1135_v9  ;;  %v2082_v46 = vsel %vm337_vm10, 1.0, %v2641_v42  ;;  %vm753_vm12 = vcmp.eq.s32.totalorder %v3673_v4, %v2814_v32  ;;  %2484 = vmatprep.subr.bf16.mxu1 %v2483_v10  ;;  %v2086_v48 = vsel %vm341_vm11, 1.0, %v2641_v42 }
 0x134   : > { %v1683_v47 = vadd.f32 %v2340_v44, %v1139_v8  ;;  %vm757_vm13 = vcmp.eq.s32.totalorder %v3820_v60, %v2814_v32  ;;  %v2210_v49 = vsel %vm753_vm12, 1.0, %v2641_v42  ;;  %vm1297_vm14 = vcmp.eq.s32.totalorder %v3673_v4, %v2830_v40 }
 0x135   : > { %v2214_v50 = vsel %vm757_vm13, 1.0, %v2641_v42  ;;  %v1137_v51 = vsub.f32 %v2082_v46, %v2210_v49  ;;  %vm1301_vm15 = vcmp.eq.s32.totalorder %v3820_v60, %v2830_v40  ;;  %v2338_v54 = vsel %vm1297_vm14, 1.0, %v2641_v42 }
 0x136   : > { %v2421_v52 = vpack.c.bf16 %v1683_v47, %v1679_v45  ;;  %v1141_v53 = vsub.f32 %v2086_v48, %v2214_v50  ;;  %v2342_v55 = vsel %vm1301_vm15, 1.0, %v2641_v42  ;;  %v3895_v57 = vadd.s32 224, %v2770_v1 }
 0x137   : > { %v1681_v56 = vadd.f32 %v2338_v54, %v1137_v51  ;;  %v3898_v58 = vadd.s32 232, %v2770_v1  ;;  %v3901_v4 = vadd.s32 240, %v2770_v1  ;;  %v3904_v60 = vadd.s32 248, %v2770_v1 }
 0x138   : > { %2422 = vmatpush1.bf16.msra.mxu0 %v2421_v52  ;;  %v1685_v59 = vadd.f32 %v2342_v55, %v1141_v53  ;;  %vm344_vm0 = vcmp.eq.s32.totalorder %v3895_v57, %v2804_v27  ;;  %vm760_vm2 = vcmp.eq.s32.totalorder %v3895_v57, %v2812_v31  ;;  %vm1304_vm4 = vcmp.eq.s32.totalorder %v3895_v57, %v2828_v39 }
 0x139   : > { %vm348_vm1 = vcmp.eq.s32.totalorder %v3898_v58, %v2804_v27  ;;  %vm764_vm3 = vcmp.eq.s32.totalorder %v3898_v58, %v2812_v31  ;;  %v2089_v3 = vsel %vm344_vm0, 1.0, %v2641_v42  ;;  %v2217_v62 = vsel %vm760_vm2, 1.0, %v2641_v42 }
 0x13a   : > { %v2485_v61 = vpack.c.bf16 %v1685_v59, %v1681_v56  ;;  %v2093_v24 = vsel %vm348_vm1, 1.0, %v2641_v42  ;;  %v2221_v63 = vsel %vm764_vm3, 1.0, %v2641_v42  ;;  %v1144_v0 = vsub.f32 %v2089_v3, %v2217_v62 }
 0x13b   : > { %vm1308_vm5 = vcmp.eq.s32.totalorder %v3898_v58, %v2828_v39  ;;  %v1148_v2 = vsub.f32 %v2093_v24, %v2221_v63  ;;  %v2345_v19 = vsel %vm1304_vm4, 1.0, %v2641_v42  ;;  %vm346_vm6 = vcmp.eq.s32.totalorder %v3895_v57, %v2808_v29 }
 0x13c   : > { %2486 = vmatpush1.bf16.msra.mxu1 %v2485_v61  ;;  %v2349_v15 = vsel %vm1308_vm5, 1.0, %v2641_v42  ;;  %v1688_v5 = vadd.f32 %v2345_v19, %v1144_v0  ;;  %vm350_vm7 = vcmp.eq.s32.totalorder %v3898_v58, %v2808_v29  ;;  %v2091_v18 = vsel %vm346_vm6, 1.0, %v2641_v42 }
 0x13d   : > { %vm762_vm8 = vcmp.eq.s32.totalorder %v3895_v57, %v2816_v33  ;;  %v1692_v6 = vadd.f32 %v2349_v15, %v1148_v2  ;;  %v2095_v7 = vsel %vm350_vm7, 1.0, %v2641_v42  ;;  %vm766_vm9 = vcmp.eq.s32.totalorder %v3898_v58, %v2816_v33 }
 0x13e   : > { %v2219_v14 = vsel %vm762_vm8, 1.0, %v2641_v42  ;;  %v2223_v34 = vsel %vm766_vm9, 1.0, %v2641_v42  ;;  %vm1306_vm10 = vcmp.eq.s32.totalorder %v3895_v57, %v2832_v41  ;;  %vm1310_vm11 = vcmp.eq.s32.totalorder %v3898_v58, %v2832_v41 }
 0x13f   : > { %v1146_v25 = vsub.f32 %v2091_v18, %v2219_v14  ;;  %v2423_v20 = vpack.c.bf16 %v1692_v6, %v1688_v5  ;;  %v1150_v21 = vsub.f32 %v2095_v7, %v2223_v34  ;;  %v2347_v22 = vsel %vm1306_vm10, 1.0, %v2641_v42 }
 0x140   : > { %v2351_v23 = vsel %vm1310_vm11, 1.0, %v2641_v42  ;;  %vm343_vm12 = vcmp.eq.s32.totalorder %v3895_v57, %v2802_v26  ;;  %vm347_vm13 = vcmp.eq.s32.totalorder %v3898_v58, %v2802_v26  ;;  %vm759_vm14 = vcmp.eq.s32.totalorder %v3895_v57, %v2810_v30 }
 0x141   : > { %v1690_v17 = vadd.f32 %v2347_v22, %v1146_v25  ;;  %2424 = vmatprep.subr.bf16.mxu0 %v2423_v20  ;;  %v1694_v13 = vadd.f32 %v2351_v23, %v1150_v21  ;;  %v2088_v35 = vsel %vm343_vm12, 1.0, %v2641_v42  ;;  %v2092_v16 = vsel %vm347_vm13, 1.0, %v2641_v42 }
 0x142   : > { %vm763_vm15 = vcmp.eq.s32.totalorder %v3898_v58, %v2810_v30  ;;  %v2216_v36 = vsel %vm759_vm14, 1.0, %v2641_v42  ;;  %vm1303_vm0 = vcmp.eq.s32.totalorder %v3895_v57, %v2826_v38  ;;  %vm1307_vm1 = vcmp.eq.s32.totalorder %v3898_v58, %v2826_v38 }
 0x143   : > { %v2220_v11 = vsel %vm763_vm15, 1.0, %v2641_v42  ;;  %v2487_v37 = vpack.c.bf16 %v1694_v13, %v1690_v17  ;;  %v1143_v12 = vsub.f32 %v2088_v35, %v2216_v36  ;;  %v2344_v43 = vsel %vm1303_vm0, 1.0, %v2641_v42 }
 0x144   : > { %v1147_v9 = vsub.f32 %v2092_v16, %v2220_v11  ;;  %v2348_v10 = vsel %vm1307_vm1, 1.0, %v2641_v42  ;;  %vm345_vm2 = vcmp.eq.s32.totalorder %v3895_v57, %v2806_v28  ;;  %vm349_vm3 = vcmp.eq.s32.totalorder %v3898_v58, %v2806_v28 }
 0x145   : > { %vm761_vm4 = vcmp.eq.s32.totalorder %v3895_v57, %v2814_v32  ;;  %2488 = vmatprep.subr.bf16.mxu1 %v2487_v37  ;;  %v1687_v8 = vadd.f32 %v2344_v43, %v1143_v12  ;;  %v2090_v45 = vsel %vm345_vm2, 1.0, %v2641_v42  ;;  %v2094_v46 = vsel %vm349_vm3, 1.0, %v2641_v42 }
 0x146   : > { %v1691_v44 = vadd.f32 %v2348_v10, %v1147_v9  ;;  %vm765_vm5 = vcmp.eq.s32.totalorder %v3898_v58, %v2814_v32  ;;  %v2218_v47 = vsel %vm761_vm4, 1.0, %v2641_v42  ;;  %vm1305_vm6 = vcmp.eq.s32.totalorder %v3895_v57, %v2830_v40 }
 0x147   : > { %vm1309_vm7 = vcmp.eq.s32.totalorder %v3898_v58, %v2830_v40  ;;  %v2222_v49 = vsel %vm765_vm5, 1.0, %v2641_v42  ;;  %v1145_v50 = vsub.f32 %v2090_v45, %v2218_v47  ;;  %v2346_v51 = vsel %vm1305_vm6, 1.0, %v2641_v42 }
 0x148   : > { %v2425_v48 = vpack.c.bf16 %v1691_v44, %v1687_v8  ;;  %v1149_v52 = vsub.f32 %v2094_v46, %v2222_v49  ;;  %v2350_v53 = vsel %vm1309_vm7, 1.0, %v2641_v42  ;;  %vm352_vm8 = vcmp.eq.s32.totalorder %v3901_v4, %v2804_v27 }
 0x149   : > { %vm356_vm9 = vcmp.eq.s32.totalorder %v3904_v60, %v2804_v27  ;;  %v1689_v54 = vadd.f32 %v2346_v51, %v1145_v50  ;;  %v2097_v55 = vsel %vm352_vm8, 1.0, %v2641_v42  ;;  %vm768_vm10 = vcmp.eq.s32.totalorder %v3901_v4, %v2812_v31 }
 0x14a   : > { %2426 = vmatpush1.bf16.msra.mxu0 %v2425_v48  ;;  %v2101_v56 = vsel %vm356_vm9, 1.0, %v2641_v42  ;;  %v1693_v57 = vadd.f32 %v2350_v53, %v1149_v52  ;;  %vm772_vm11 = vcmp.eq.s32.totalorder %v3904_v60, %v2812_v31  ;;  %v2225_v58 = vsel %vm768_vm10, 1.0, %v2641_v42 }
 0x14b   : > { %vm1312_vm12 = vcmp.eq.s32.totalorder %v3901_v4, %v2828_v39  ;;  %v2229_v27 = vsel %vm772_vm11, 1.0, %v2641_v42  ;;  %v1152_v59 = vsub.f32 %v2097_v55, %v2225_v58  ;;  %vm1316_vm13 = vcmp.eq.s32.totalorder %v3904_v60, %v2828_v39 }
 0x14c   : > { %v2353_v61 = vsel %vm1312_vm12, 1.0, %v2641_v42  ;;  %v2489_v3 = vpack.c.bf16 %v1693_v57, %v1689_v54  ;;  %v1156_v24 = vsub.f32 %v2101_v56, %v2229_v27  ;;  %v2357_v62 = vsel %vm1316_vm13, 1.0, %v2641_v42 }
 0x14d   : > { %vm354_vm14 = vcmp.eq.s32.totalorder %v3901_v4, %v2808_v29  ;;  %v1696_v31 = vadd.f32 %v2353_v61, %v1152_v59  ;;  %vm358_vm15 = vcmp.eq.s32.totalorder %v3904_v60, %v2808_v29  ;;  %vm770_vm0 = vcmp.eq.s32.totalorder %v3901_v4, %v2816_v33 }
 0x14e   : > { %v2099_v63 = vsel %vm354_vm14, 1.0, %v2641_v42  ;;  %2490 = vmatpush1.bf16.msra.mxu1 %v2489_v3  ;;  %v1700_v39 = vadd.f32 %v2357_v62, %v1156_v24  ;;  %v2103_v0 = vsel %vm358_vm15, 1.0, %v2641_v42  ;;  %vm774_vm1 = vcmp.eq.s32.totalorder %v3904_v60, %v2816_v33 }
 0x14f   : > { %v2227_v2 = vsel %vm770_vm0, 1.0, %v2641_v42  ;;  %v2231_v19 = vsel %vm774_vm1, 1.0, %v2641_v42  ;;  %vm1314_vm2 = vcmp.eq.s32.totalorder %v3901_v4, %v2832_v41  ;;  %vm1318_vm3 = vcmp.eq.s32.totalorder %v3904_v60, %v2832_v41 }
 0x150   : > { %v1154_v15 = vsub.f32 %v2099_v63, %v2227_v2  ;;  %v2427_v29 = vpack.c.bf16 %v1700_v39, %v1696_v31  ;;  %v1158_v5 = vsub.f32 %v2103_v0, %v2231_v19  ;;  %v2355_v18 = vsel %vm1314_vm2, 1.0, %v2641_v42 }
 0x151   : > { %v2359_v6 = vsel %vm1318_vm3, 1.0, %v2641_v42  ;;  %vm351_vm4 = vcmp.eq.s32.totalorder %v3901_v4, %v2802_v26  ;;  %vm355_vm5 = vcmp.eq.s32.totalorder %v3904_v60, %v2802_v26  ;;  %vm767_vm6 = vcmp.eq.s32.totalorder %v3901_v4, %v2810_v30 }
 0x152   : > { %v1698_v7 = vadd.f32 %v2355_v18, %v1154_v15  ;;  %2428 = vmatprep.subr.bf16.mxu0 %v2427_v29  ;;  %v1702_v33 = vadd.f32 %v2359_v6, %v1158_v5  ;;  %v2096_v41 = vsel %vm351_vm4, 1.0, %v2641_v42  ;;  %v2100_v14 = vsel %vm355_vm5, 1.0, %v2641_v42 }
 0x153   : > { %vm771_vm7 = vcmp.eq.s32.totalorder %v3904_v60, %v2810_v30  ;;  %v2224_v34 = vsel %vm767_vm6, 1.0, %v2641_v42  ;;  %vm1311_vm8 = vcmp.eq.s32.totalorder %v3901_v4, %v2826_v38  ;;  %vm1315_vm9 = vcmp.eq.s32.totalorder %v3904_v60, %v2826_v38 }
 0x154   : > { %v2228_v25 = vsel %vm771_vm7, 1.0, %v2641_v42  ;;  %v2491_v26 = vpack.c.bf16 %v1702_v33, %v1698_v7  ;;  %v1151_v20 = vsub.f32 %v2096_v41, %v2224_v34  ;;  %v2352_v22 = vsel %vm1311_vm8, 1.0, %v2641_v42 }
 0x155   : > { %v1155_v21 = vsub.f32 %v2100_v14, %v2228_v25  ;;  %v2356_v23 = vsel %vm1315_vm9, 1.0, %v2641_v42  ;;  %vm353_vm10 = vcmp.eq.s32.totalorder %v3901_v4, %v2806_v28  ;;  %vm357_vm11 = vcmp.eq.s32.totalorder %v3904_v60, %v2806_v28 }
 0x156   : > { %vm769_vm12 = vcmp.eq.s32.totalorder %v3901_v4, %v2814_v32  ;;  %2492 = vmatprep.subr.bf16.mxu1 %v2491_v26  ;;  %v1695_v30 = vadd.f32 %v2352_v22, %v1151_v20  ;;  %v2098_v38 = vsel %vm353_vm10, 1.0, %v2641_v42  ;;  %v2102_v13 = vsel %vm357_vm11, 1.0, %v2641_v42 }
 0x157   : > { %v1699_v17 = vadd.f32 %v2356_v23, %v1155_v21  ;;  %vm773_vm13 = vcmp.eq.s32.totalorder %v3904_v60, %v2814_v32  ;;  %v2226_v35 = vsel %vm769_vm12, 1.0, %v2641_v42  ;;  %vm1313_vm14 = vcmp.eq.s32.totalorder %v3901_v4, %v2830_v40  ;;  %v164_v32 = vld [vmem:[%s4111_s1] sm:$0xff] }
 0x158   : > { %vm1317_vm15 = vcmp.eq.s32.totalorder %v3904_v60, %v2830_v40  ;;  %v2230_v16 = vsel %vm773_vm13, 1.0, %v2641_v42  ;;  %v1153_v36 = vsub.f32 %v2098_v38, %v2226_v35  ;;  %v2354_v11 = vsel %vm1313_vm14, 1.0, %v2641_v42 }
 0x159   : > { %v2429_v28 = vpack.c.bf16 %v1699_v17, %v1695_v30  ;;  %v1157_v37 = vsub.f32 %v2102_v13, %v2230_v16  ;;  %v2358_v12 = vsel %vm1317_vm15, 1.0, %v2641_v42  ;;  %vm1873_vm0 = vcmp.eq.s32.totalorder %v2770_v1, 3 }
 0x15a   : > { %v1697_v9 = vadd.f32 %v2354_v11, %v1153_v36 }
 0x15b   : > { %2430 = vmatpush1.bf16.msra.mxu0 %v2429_v28  ;;  %v1701_v43 = vadd.f32 %v2358_v12, %v1157_v37 }
 0x15d   : > { %v2493_v4 = vpack.c.bf16 %v1701_v43, %v1697_v9 }
 0x15e   : > { %1768 = vmatmul.mubr.f32.vlgmr.msra.gmra.mrb[0].mxu0 %v164_v32 }
 0x15f   : > { %2494 = vmatpush1.bf16.msra.mxu1 %v2493_v4 }
 0x162   : > { %1839 = vmatmul.mubr.f32.vlgmr.msra.gmra.mrb[0].mxu1 %v164_v32 }
 0x231   : > { %v1769_v40 = vpop.f32.mrb[0].mxu0 }
 0x232   : > { %v1845_v60 = vmul.f32 %v1769_v40, %v1769_v40  ;;  %v1771_v10 = vpop.f32.mrb[1].mxu0 }
 0x233   : > { %v1846_v8 = vmul.f32 %v1771_v10, %v1771_v10 }
 0x234   : > { %v1849_v44 = vrot.slane %v1845_v60, 4 }
 0x235   : > { %v1855_v45 = vrot.slane %v1846_v8, 4  ;;  %v1840_v42 = vpop.f32.mrb[0].mxu1 }
 0x236   : > { %v1850_v46 = vadd.f32 %v1849_v44, %v1845_v60  ;;  %v1847_v47 = vmul.f32 %v1840_v42, %v1840_v42  ;;  %v1842_v49 = vpop.f32.mrb[1].mxu1 }
 0x237   : > { %v1856_v48 = vadd.f32 %v1855_v45, %v1846_v8  ;;  %v1848_v51 = vmul.f32 %v1842_v49, %v1842_v49 }
 0x238   : > { %v1851_v50 = vrot.slane %v1850_v46, 2  ;;  %v1861_v52 = vrot.slane %v1847_v47, 4 }
 0x239   : > { %v1857_v53 = vrot.slane %v1856_v48, 2  ;;  %v1867_v55 = vrot.slane %v1848_v51, 4 }
 0x23a   : > { %v1852_v54 = vadd.f32 %v1851_v50, %v1850_v46  ;;  %v1862_v56 = vadd.f32 %v1861_v52, %v1847_v47 }
 0x23b   : > { %v1858_v57 = vadd.f32 %v1857_v53, %v1856_v48  ;;  %v1868_v27 = vadd.f32 %v1867_v55, %v1848_v51 }
 0x23c   : > { %v1853_v58 = vrot.slane %v1852_v54, 1  ;;  %v1863_v59 = vrot.slane %v1862_v56, 2 }
 0x23d   : > { %v1859_v61 = vrot.slane %v1858_v57, 1  ;;  %v1869_v24 = vrot.slane %v1868_v27, 2 }
 0x23e   : > { %v1854_v3 = vadd.f32 %v1853_v58, %v1852_v54  ;;  %v1864_v62 = vadd.f32 %v1863_v59, %v1862_v56 }
 0x23f   : > { %v1860_v31 = vadd.f32 %v1859_v61, %v1858_v57  ;;  %v1870_v39 = vadd.f32 %v1869_v24, %v1868_v27 }
 0x240   : > { %v1874_v63 = vsel %vm1873_vm0, %v1854_v3, %v1769_v40  ;;  %v1865_v0 = vrot.slane %v1864_v62, 1 }
 0x241   : > { %1878 = vst [vmem:[%s159_s5] sm:$0xff] %v1874_v63  ;;  %v1875_v2 = vsel %vm1873_vm0, %v1860_v31, %v1771_v10  ;;  %v1871_v19 = vrot.slane %v1870_v39, 1 }
 0x242   : > { %1879 = vst [vmem:[%s159_s5 + $0x8] sm:$0xff] %v1875_v2  ;;  %v1866_v15 = vadd.f32 %v1865_v0, %v1864_v62 }
 0x243   : > { %v1872_v29 = vadd.f32 %v1871_v19, %v1870_v39 }
 0x244   : > { %v1876_v5 = vsel %vm1873_vm0, %v1866_v15, %v1840_v42 }
 0x245   : > { %1880 = vst [vmem:[%s159_s5 + $0x10] sm:$0xff] %v1876_v5  ;;  %v1877_v18 = vsel %vm1873_vm0, %v1872_v29, %v1842_v49 }
 0x246   : > { %1881 = vst [vmem:[%s159_s5 + $0x18] sm:$0xff] %v1877_v18 }
 0x247   : > { %2585 = shalt.err (!%p2582_p3)
}
 0x248   : > { %s2586_s25 = scalar_lea.hbm %s4065_s16, 512  ;;  %s2590_s29 = scalar_lea.hbm %s4112_s2, 13824 }
 0x249   : > { %p2587_p5 = scmp.ne.s32.totalorder %s4065_s16, %s2586_s25  ;;  %p2591_p13 = scmp.lt.u32.totalorder %s4065_s16, %s4112_s2 }
 0x24a   : > { %p2592_p0 = scmp.lt.u32.totalorder %s2590_s29, %s2586_s25  ;;  %p2594_p6 = scmp.lt.u32.totalorder %s2586_s25, %s4065_s16 }
 0x24b   : > { %p2588_p7 = pnand %p2587_p5, %p4121_p10 }
 0x24c   : > { %p2593_p2 = por %p2592_p0, %p2591_p13 }
 0x24d   : > { %p2589_p8 = pneg %p2588_p7 }
 0x24e   : > { %p2595_p11 = por %p2594_p6, %p2593_p2 }
 0x250   : > { %p2596_p12 = pnand %p2595_p11, %p2589_p8 }
 0x252   : > { %2599 = shalt.err (!%p2596_p12)
}
 0x253   : > { %2497 = dma.vmem_to_hbm [thread:$0]  (%p4121_p10), %s4067_s7, 512, %s4065_s16, %s1883_s13  }
 0x254 PF: > { %p2508_p4 = scmp.ge.s32.totalorder %s2638_s12, 2  ;;  %s1909_s30 = sand.u32 1, %s2626_s9  }
 0x255   : > { %p4122_p9 = scmp.ne.s32.totalorder %s4117_s22, 0  ;;  %s1910_s3 = scalar_lea.sflag [#allocation4], %s1909_s30 }
 0x257   : > { %p2504_p1 = pnand %p2508_p4, %p4122_p9 }
 0x259   : > { %2621 = dma.done.wait (!%p2504_p1), %s1910_s3, 512  }
 0x25a   : > { %2623 = vsyncadd (!%p2504_p1), %s1910_s3, 4294966784  ;;  %p15_p3 = scmp.ge.s32.totalorder %s2683_s15, 29   ;;  %s4123_s9 = smov %s2630_s10 }
 0x25b   : > { %s4124_s10 = smov %s2634_s11  ;;  %s4125_s11 = smov %s2695_s18 }
 0x25c   : > { %s4126_s12 = smov %s2683_s15  ;;  %17 = sbr.rel (!%p15_p3) target bundleno = 5 (0x5), region = 73 }
 0x263   :  { %1915 = vsyncpa [#allocation3], 1 }
 0x264   :  { %1917 = vsyncpa [#allocation3 + $0x1], 1 }
 0x265   :  { %1918 = vsyncpa [#allocation4], 1 }
 0x266   :  { %1920 = vsyncpa [#allocation4 + $0x1], 1 }

</bundles_post_ra>
